<compile_context>
chip_gen: v7x
topology: tpu7x:2x2x1
jax: 0.10.0
libtpu: 0.0.40
codegen_flags: <defaults>
</compile_context>

<pallas_src>
import functools
import math

import jax
import jax.numpy as jnp
from jax.experimental import pallas as pl
from jax.experimental.pallas import tpu as pltpu


def _transformer_block_kernel(
    x_ref, wqkv_ref, bqkv_ref, wo_ref, bo_ref, g1_ref, be1_ref,
    w1_ref, b1_ref, w2_ref, b2_ref, g2_ref, be2_ref,
    o_ref, attn_cat_ref, *, num_heads,
):
    _, n, e = x_ref.shape
    head_dim = e // num_heads
    eps = 1e-5  # torch.nn.LayerNorm default
    f32 = jnp.float32

    x = x_ref[0]                     # (N, E), kept in the MXU operand dtype
    cdt = x.dtype

    # ---- Fused QKV projection: one (N, E) @ (E, 3E) dot, f32 accumulation ----
    # Column layout of wqkv is [Q | K | V]; softmax scale already folded into Q.
    qkv = jnp.dot(x, wqkv_ref[...], preferred_element_type=f32) + bqkv_ref[...]

    # ---- Per-head attention; each head's output lands in the concat buffer ----
    for h in range(num_heads):
        q0 = h * head_dim
        k0 = e + h * head_dim
        v0 = 2 * e + h * head_dim
        q = qkv[:, q0:q0 + head_dim].astype(cdt)
        k = qkv[:, k0:k0 + head_dim].astype(cdt)
        v = qkv[:, v0:v0 + head_dim].astype(cdt)

        # scores = q @ k^T (contract head dim of both -> no explicit transpose)
        s = jax.lax.dot_general(
            q, k, dimension_numbers=(((1,), (1,)), ((), ())),
            preferred_element_type=f32)                      # (N, N), scale folded
        s = s - jnp.max(s, axis=-1, keepdims=True)
        p = jnp.exp(s)
        # EUP reciprocal instead of a VALU divide over the (N, N) tile.
        p = p * pl.reciprocal(jnp.sum(p, axis=-1, keepdims=True), approx=True)

        o_h = jnp.dot(p.astype(cdt), v, preferred_element_type=f32)   # (N, Dh)
        attn_cat_ref[:, q0:q0 + head_dim] = o_h

    # ---- Single out-projection over the concatenated heads (K = E) ----
    attn = jnp.dot(attn_cat_ref[...].astype(cdt), wo_ref[...],
                   preferred_element_type=f32) + bo_ref[...]

    def layer_norm(z, g, b):
        # One-pass mean / mean-of-squares: halves the cross-lane reductions.
        mu = jnp.mean(z, axis=-1, keepdims=True)
        ms = jnp.mean(z * z, axis=-1, keepdims=True)
        var = jnp.maximum(ms - mu * mu, 0.0)
        return (z - mu) * jax.lax.rsqrt(var + eps) * g + b

    # ---- Residual + LayerNorm 1 (f32 elementwise math) ----
    y = layer_norm(x.astype(f32) + attn, g1_ref[...], be1_ref[...])

    # ---- Feed-forward: Linear1 -> ReLU -> Linear2 ----
    h1 = jnp.dot(y.astype(cdt), w1_ref[...], preferred_element_type=f32) + b1_ref[...]
    h1 = jnp.maximum(h1, 0.0)
    ff = jnp.dot(h1.astype(cdt), w2_ref[...], preferred_element_type=f32) + b2_ref[...]

    # ---- Residual + LayerNorm 2; single downcast at the output store ----
    z = layer_norm(y + ff, g2_ref[...], be2_ref[...])
    o_ref[0] = z.astype(o_ref.dtype)


def transformer_block(x, params, *, num_heads, compute_dtype=None):
    """x: (B, N, E).  params hold PyTorch-layout weights (Linear: y = x @ W.T + b).

    compute_dtype controls the MXU operand dtype (defaults to x.dtype); LN /
    softmax / residual math is always f32, accumulation is always f32.
    """
    B, N, E = x.shape
    assert E % num_heads == 0
    head_dim = E // num_heads
    FF = params["w1"].shape[0]
    f32 = jnp.float32

    in_dtype = x.dtype
    cdt = jnp.dtype(compute_dtype) if compute_dtype is not None else in_dtype
    x = x.astype(cdt)
    scale = 1.0 / math.sqrt(head_dim)

    # Fused QKV weight (E, 3E) with columns [Q | K | V]; softmax scale folded into
    # the Q columns and Q bias so the kernel never scales the (N, N) scores.
    wqkv = jnp.concatenate(
        [params["wq"].T * scale, params["wk"].T, params["wv"].T], axis=1).astype(cdt)
    bqkv = jnp.concatenate(
        [params["bq"] * scale, params["bk"], params["bv"]]).reshape(1, 3 * E).astype(f32)
    wo_t = params["wo"].T.astype(cdt)                      # (E, E)
    bo = params["bo"].reshape(1, E).astype(f32)
    g1 = params["g1"].reshape(1, E).astype(f32)
    be1 = params["be1"].reshape(1, E).astype(f32)
    w1_t = params["w1"].T.astype(cdt)                      # (E, FF)
    b1 = params["b1"].reshape(1, FF).astype(f32)
    w2_t = params["w2"].T.astype(cdt)                      # (FF, E)
    b2 = params["b2"].reshape(1, E).astype(f32)
    g2 = params["g2"].reshape(1, E).astype(f32)
    be2 = params["be2"].reshape(1, E).astype(f32)

    weights = (wqkv, bqkv, wo_t, bo, g1, be1, w1_t, b1, w2_t, b2, g2, be2)

    kernel = functools.partial(_transformer_block_kernel, num_heads=num_heads)

    x_spec = pl.BlockSpec((1, N, E), lambda b: (b, 0, 0))
    out_spec = pl.BlockSpec((1, N, E), lambda b: (b, 0, 0))

    # Advisory cost so XLA schedules neighbors around this fused call correctly.
    flops = 2 * B * N * (4 * E * E + 2 * N * E + 2 * E * FF)
    transcendentals = B * N * (num_heads * N + 2)          # softmax exp + LN rsqrt
    bytes_accessed = (2 * x.size * x.dtype.itemsize
                      + sum(int(w.size) * w.dtype.itemsize for w in weights))
    cost = pl.CostEstimate(flops=flops, transcendentals=transcendentals,
                           bytes_accessed=bytes_accessed)

    # Explicit scoped-VMEM budget: weights + pipelined activation tiles + f32
    # working set, with headroom; clamped to a sane range.
    weight_bytes = sum(int(w.size) * w.dtype.itemsize for w in weights)
    act_bytes = 2 * 2 * N * E * x.dtype.itemsize           # double-buffered in/out tile
    work_bytes = (5 * N * E + 2 * N * N + N * max(3 * E, FF)) * 4
    vmem_limit = int(min(max(2 * (weight_bytes + act_bytes + work_bytes),
                             32 * 1024 * 1024),
                         128 * 1024 * 1024))

    def build(single_buffer_weights):
        def w_spec(a):
            nd = a.ndim
            idx = lambda b, _nd=nd: (0,) * _nd
            if single_buffer_weights:
                # Grid-invariant weights: a second pipeline buffer is pure waste.
                return pl.BlockSpec(a.shape, idx, pipeline_mode=pl.Buffered(1))
            return pl.BlockSpec(a.shape, idx)

        return pl.pallas_call(
            kernel,
            out_shape=jax.ShapeDtypeStruct((B, N, E), in_dtype),
            grid_spec=pltpu.PrefetchScalarGridSpec(
                num_scalar_prefetch=0,
                grid=(B,),
                in_specs=[x_spec] + [w_spec(w) for w in weights],
                out_specs=out_spec,
                scratch_shapes=[pltpu.VMEM((N, E), jnp.float32)],  # head-concat buffer
            ),
            compiler_params=pltpu.CompilerParams(
                dimension_semantics=("parallel",),
                vmem_limit_bytes=vmem_limit,
            ),
            cost_estimate=cost,
        )

    try:
        return build(True)(x, *weights)
    except Exception:
        # Fallback if pipeline_mode=pl.Buffered(1) is unsupported by this build:
        # identical kernel, default double-buffered weight specs.
        return build(False)(x, *weights)


def _reference_transformer_block(x, p, *, num_heads, eps=1e-5):
    """Pure-JAX mirror of the PyTorch TransformerBlock.forward (eval mode)."""
    B, N, E = x.shape
    Dh = E // num_heads
    hp = jax.lax.Precision.HIGHEST

    def linear(z, w, b):
        return jnp.einsum("bnf,gf->bng", z, w, precision=hp) + b

    def layer_norm(z, g, b):
        mu = jnp.mean(z, axis=-1, keepdims=True)
        var = jnp.mean((z - mu) ** 2, axis=-1, keepdims=True)
        return (z - mu) * jax.lax.rsqrt(var + eps) * g + b

    q = linear(x, p["wq"], p["bq"]).reshape(B, N, num_heads, Dh).transpose(0, 2, 1, 3)
    k = linear(x, p["wk"], p["bk"]).reshape(B, N, num_heads, Dh).transpose(0, 2, 1, 3)
    v = linear(x, p["wv"], p["bv"]).reshape(B, N, num_heads, Dh).transpose(0, 2, 1, 3)
    s = jnp.einsum("bhqd,bhkd->bhqk", q, k, precision=hp) / math.sqrt(Dh)
    a = jax.nn.softmax(s, axis=-1)
    o = jnp.einsum("bhqk,bhkd->bhqd", a, v, precision=hp)
    o = o.transpose(0, 2, 1, 3).reshape(B, N, E)
    attn_out = linear(o, p["wo"], p["bo"])
    y = layer_norm(x + attn_out, p["g1"], p["be1"])
    h1 = jax.nn.relu(linear(y, p["w1"], p["b1"]))
    ff = linear(h1, p["w2"], p["b2"])
    return layer_norm(y + ff, p["g2"], p["be2"])


if __name__ == "__main__":
    B, N, E = 2, 8, 32
    num_heads = 4
    dim_ff = 64

    key = jax.random.PRNGKey(0)
    ks = jax.random.split(key, 17)
    sE = 1.0 / math.sqrt(E)
    sF = 1.0 / math.sqrt(dim_ff)

    params = dict(
        wq=jax.random.normal(ks[0], (E, E), jnp.float32) * sE,
        wk=jax.random.normal(ks[1], (E, E), jnp.float32) * sE,
        wv=jax.random.normal(ks[2], (E, E), jnp.float32) * sE,
        bq=jax.random.normal(ks[3], (E,), jnp.float32) * 0.05,
        bk=jax.random.normal(ks[4], (E,), jnp.float32) * 0.05,
        bv=jax.random.normal(ks[5], (E,), jnp.float32) * 0.05,
        wo=jax.random.normal(ks[6], (E, E), jnp.float32) * sE,
        bo=jax.random.normal(ks[7], (E,), jnp.float32) * 0.05,
        g1=1.0 + 0.05 * jax.random.normal(ks[8], (E,), jnp.float32),
        be1=0.05 * jax.random.normal(ks[9], (E,), jnp.float32),
        w1=jax.random.normal(ks[10], (dim_ff, E), jnp.float32) * sE,
        b1=jax.random.normal(ks[11], (dim_ff,), jnp.float32) * 0.05,
        w2=jax.random.normal(ks[12], (E, dim_ff), jnp.float32) * sF,
        b2=jax.random.normal(ks[13], (E,), jnp.float32) * 0.05,
        g2=1.0 + 0.05 * jax.random.normal(ks[14], (E,), jnp.float32),
        be2=0.05 * jax.random.normal(ks[15], (E,), jnp.float32),
    )
    x = jax.random.normal(ks[16], (B, N, E), jnp.float32)

    out = transformer_block(x, params, num_heads=num_heads)
    out = jax.block_until_ready(out)

    ref = _reference_transformer_block(x, params, num_heads=num_heads)
    assert out.shape == (B, N, E)
    max_err = float(jnp.max(jnp.abs(out - ref)))
    assert max_err < 2e-2, f"max abs error {max_err}"

    print("KERNEL_OK")
</pallas_src>

<mosaic_0001>
module attributes {stable_mosaic.version = 11 : i64} {
  func.func @_transformer_block_kernel(%arg0: i32, %arg1: memref<1x8x32xf32, #tpu.memory_space<vmem>>, %arg2: memref<32x96xf32, #tpu.memory_space<vmem>>, %arg3: memref<1x96xf32, #tpu.memory_space<vmem>>, %arg4: memref<32x32xf32, #tpu.memory_space<vmem>>, %arg5: memref<1x32xf32, #tpu.memory_space<vmem>>, %arg6: memref<1x32xf32, #tpu.memory_space<vmem>>, %arg7: memref<1x32xf32, #tpu.memory_space<vmem>>, %arg8: memref<32x64xf32, #tpu.memory_space<vmem>>, %arg9: memref<1x64xf32, #tpu.memory_space<vmem>>, %arg10: memref<64x32xf32, #tpu.memory_space<vmem>>, %arg11: memref<1x32xf32, #tpu.memory_space<vmem>>, %arg12: memref<1x32xf32, #tpu.memory_space<vmem>>, %arg13: memref<1x32xf32, #tpu.memory_space<vmem>>, %arg14: memref<1x8x32xf32, #tpu.memory_space<vmem>>, %arg15: memref<8x32xf32, #tpu.memory_space<vmem>>) attributes {dimension_semantics = [#tpu.dimension_semantics<parallel>], iteration_bounds = array<i64: 2>, scalar_prefetch = 0 : i64, scratch_operands = 1 : i64, tpu.core_type = #tpu.core_type<tc>, window_params = [{transform_indices = @transform_0, window_bounds = array<i64: 1, 8, 32>}, {pipeline_mode = #tpu.pipeline_mode<synchronous>, transform_indices = @transform_1, window_bounds = array<i64: 32, 96>}, {pipeline_mode = #tpu.pipeline_mode<synchronous>, transform_indices = @transform_2, window_bounds = array<i64: 1, 96>}, {pipeline_mode = #tpu.pipeline_mode<synchronous>, transform_indices = @transform_3, window_bounds = array<i64: 32, 32>}, {pipeline_mode = #tpu.pipeline_mode<synchronous>, transform_indices = @transform_4, window_bounds = array<i64: 1, 32>}, {pipeline_mode = #tpu.pipeline_mode<synchronous>, transform_indices = @transform_5, window_bounds = array<i64: 1, 32>}, {pipeline_mode = #tpu.pipeline_mode<synchronous>, transform_indices = @transform_6, window_bounds = array<i64: 1, 32>}, {pipeline_mode = #tpu.pipeline_mode<synchronous>, transform_indices = @transform_7, window_bounds = array<i64: 32, 64>}, {pipeline_mode = #tpu.pipeline_mode<synchronous>, transform_indices = @transform_8, window_bounds = array<i64: 1, 64>}, {pipeline_mode = #tpu.pipeline_mode<synchronous>, transform_indices = @transform_9, window_bounds = array<i64: 64, 32>}, {pipeline_mode = #tpu.pipeline_mode<synchronous>, transform_indices = @transform_10, window_bounds = array<i64: 1, 32>}, {pipeline_mode = #tpu.pipeline_mode<synchronous>, transform_indices = @transform_11, window_bounds = array<i64: 1, 32>}, {pipeline_mode = #tpu.pipeline_mode<synchronous>, transform_indices = @transform_12, window_bounds = array<i64: 1, 32>}, {transform_indices = @transform_13, window_bounds = array<i64: 1, 8, 32>}]} {
    %c0 = arith.constant 0 : index
    %c0_0 = arith.constant 0 : index
    %c0_1 = arith.constant 0 : index
    %0 = vector.load %arg1[%c0, %c0_0, %c0_1] : memref<1x8x32xf32, #tpu.memory_space<vmem>>, vector<1x8x32xf32>
    %1 = vector.shape_cast %0 : vector<1x8x32xf32> to vector<8x32xf32>
    %c0_2 = arith.constant 0 : index
    %c0_3 = arith.constant 0 : index
    %2 = vector.load %arg2[%c0_2, %c0_3] : memref<32x96xf32, #tpu.memory_space<vmem>>, vector<32x96xf32>
    %cst = arith.constant dense<0.000000e+00> : vector<8x96xf32>
    %3 = tpu.matmul %1, %2, %cst {dimension_numbers = #tpu.dot_dimension_numbers<[1], [0], [0], [1], [0, 0, 1, 1], [], []>} : vector<8x32xf32>, vector<32x96xf32>, vector<8x96xf32> -> vector<8x96xf32>
    %c0_4 = arith.constant 0 : index
    %c0_5 = arith.constant 0 : index
    %4 = vector.load %arg3[%c0_4, %c0_5] : memref<1x96xf32, #tpu.memory_space<vmem>>, vector<1x96xf32>
    %5 = vector.broadcast %4 : vector<1x96xf32> to vector<8x96xf32>
    %6 = arith.addf %3, %5 : vector<8x96xf32>
    %7 = vector.extract_strided_slice %6 {offsets = [0, 0], sizes = [8, 8], strides = [1, 1]} : vector<8x96xf32> to vector<8x8xf32>
    %8 = vector.extract_strided_slice %6 {offsets = [0, 32], sizes = [8, 8], strides = [1, 1]} : vector<8x96xf32> to vector<8x8xf32>
    %9 = vector.extract_strided_slice %6 {offsets = [0, 64], sizes = [8, 8], strides = [1, 1]} : vector<8x96xf32> to vector<8x8xf32>
    %cst_6 = arith.constant dense<0.000000e+00> : vector<8x8xf32>
    %10 = tpu.matmul %7, %8, %cst_6 {dimension_numbers = #tpu.dot_dimension_numbers<[1], [1], [0], [0], [0, 0, 1, 0], [], []>} : vector<8x8xf32>, vector<8x8xf32>, vector<8x8xf32> -> vector<8x8xf32>
    %cst_7 = arith.constant dense<0xFF800000> : vector<8xf32>
    %11 = vector.multi_reduction <maximumf>, %10, %cst_7 [1] : vector<8x8xf32> to vector<8xf32>
    %12 = vector.shape_cast %11 : vector<8xf32> to vector<8x1xf32>
    %13 = vector.broadcast %12 : vector<8x1xf32> to vector<8x8xf32>
    %14 = arith.subf %10, %13 : vector<8x8xf32>
    %15 = math.exp %14 : vector<8x8xf32>
    %cst_8 = arith.constant dense<0.000000e+00> : vector<8xf32>
    %16 = vector.multi_reduction <add>, %15, %cst_8 [1] : vector<8x8xf32> to vector<8xf32>
    %17 = vector.shape_cast %16 : vector<8xf32> to vector<8x1xf32>
    %18 = tpu.reciprocal %17 {approx = true} : vector<8x1xf32> -> vector<8x1xf32>
    %19 = vector.broadcast %18 : vector<8x1xf32> to vector<8x8xf32>
    %20 = arith.mulf %15, %19 : vector<8x8xf32>
    %cst_9 = arith.constant dense<0.000000e+00> : vector<8x8xf32>
    %21 = tpu.matmul %20, %9, %cst_9 {dimension_numbers = #tpu.dot_dimension_numbers<[1], [0], [0], [1], [0, 0, 1, 1], [], []>} : vector<8x8xf32>, vector<8x8xf32>, vector<8x8xf32> -> vector<8x8xf32>
    %c0_10 = arith.constant 0 : index
    %c0_11 = arith.constant 0 : index
    %22 = vector.load %arg15[%c0_10, %c0_11] : memref<8x32xf32, #tpu.memory_space<vmem>>, vector<8x8xf32>
    tpu.vector_store %arg15[%c0_10, %c0_11], %21 {strides = array<i32>} : memref<8x32xf32, #tpu.memory_space<vmem>>, vector<8x8xf32>,
    %23 = vector.extract_strided_slice %6 {offsets = [0, 8], sizes = [8, 8], strides = [1, 1]} : vector<8x96xf32> to vector<8x8xf32>
    %24 = vector.extract_strided_slice %6 {offsets = [0, 40], sizes = [8, 8], strides = [1, 1]} : vector<8x96xf32> to vector<8x8xf32>
    %25 = vector.extract_strided_slice %6 {offsets = [0, 72], sizes = [8, 8], strides = [1, 1]} : vector<8x96xf32> to vector<8x8xf32>
    %cst_12 = arith.constant dense<0.000000e+00> : vector<8x8xf32>
    %26 = tpu.matmul %23, %24, %cst_12 {dimension_numbers = #tpu.dot_dimension_numbers<[1], [1], [0], [0], [0, 0, 1, 0], [], []>} : vector<8x8xf32>, vector<8x8xf32>, vector<8x8xf32> -> vector<8x8xf32>
    %cst_13 = arith.constant dense<0xFF800000> : vector<8xf32>
    %27 = vector.multi_reduction <maximumf>, %26, %cst_13 [1] : vector<8x8xf32> to vector<8xf32>
    %28 = vector.shape_cast %27 : vector<8xf32> to vector<8x1xf32>
    %29 = vector.broadcast %28 : vector<8x1xf32> to vector<8x8xf32>
    %30 = arith.subf %26, %29 : vector<8x8xf32>
    %31 = math.exp %30 : vector<8x8xf32>
    %cst_14 = arith.constant dense<0.000000e+00> : vector<8xf32>
    %32 = vector.multi_reduction <add>, %31, %cst_14 [1] : vector<8x8xf32> to vector<8xf32>
    %33 = vector.shape_cast %32 : vector<8xf32> to vector<8x1xf32>
    %34 = tpu.reciprocal %33 {approx = true} : vector<8x1xf32> -> vector<8x1xf32>
    %35 = vector.broadcast %34 : vector<8x1xf32> to vector<8x8xf32>
    %36 = arith.mulf %31, %35 : vector<8x8xf32>
    %cst_15 = arith.constant dense<0.000000e+00> : vector<8x8xf32>
    %37 = tpu.matmul %36, %25, %cst_15 {dimension_numbers = #tpu.dot_dimension_numbers<[1], [0], [0], [1], [0, 0, 1, 1], [], []>} : vector<8x8xf32>, vector<8x8xf32>, vector<8x8xf32> -> vector<8x8xf32>
    %c0_16 = arith.constant 0 : index
    %c8 = arith.constant 8 : index
    %38 = vector.load %arg15[%c0_16, %c8] : memref<8x32xf32, #tpu.memory_space<vmem>>, vector<8x8xf32>
    tpu.vector_store %arg15[%c0_16, %c8], %37 {strides = array<i32>} : memref<8x32xf32, #tpu.memory_space<vmem>>, vector<8x8xf32>,
    %39 = vector.extract_strided_slice %6 {offsets = [0, 16], sizes = [8, 8], strides = [1, 1]} : vector<8x96xf32> to vector<8x8xf32>
    %40 = vector.extract_strided_slice %6 {offsets = [0, 48], sizes = [8, 8], strides = [1, 1]} : vector<8x96xf32> to vector<8x8xf32>
    %41 = vector.extract_strided_slice %6 {offsets = [0, 80], sizes = [8, 8], strides = [1, 1]} : vector<8x96xf32> to vector<8x8xf32>
    %cst_17 = arith.constant dense<0.000000e+00> : vector<8x8xf32>
    %42 = tpu.matmul %39, %40, %cst_17 {dimension_numbers = #tpu.dot_dimension_numbers<[1], [1], [0], [0], [0, 0, 1, 0], [], []>} : vector<8x8xf32>, vector<8x8xf32>, vector<8x8xf32> -> vector<8x8xf32>
    %cst_18 = arith.constant dense<0xFF800000> : vector<8xf32>
    %43 = vector.multi_reduction <maximumf>, %42, %cst_18 [1] : vector<8x8xf32> to vector<8xf32>
    %44 = vector.shape_cast %43 : vector<8xf32> to vector<8x1xf32>
    %45 = vector.broadcast %44 : vector<8x1xf32> to vector<8x8xf32>
    %46 = arith.subf %42, %45 : vector<8x8xf32>
    %47 = math.exp %46 : vector<8x8xf32>
    %cst_19 = arith.constant dense<0.000000e+00> : vector<8xf32>
    %48 = vector.multi_reduction <add>, %47, %cst_19 [1] : vector<8x8xf32> to vector<8xf32>
    %49 = vector.shape_cast %48 : vector<8xf32> to vector<8x1xf32>
    %50 = tpu.reciprocal %49 {approx = true} : vector<8x1xf32> -> vector<8x1xf32>
    %51 = vector.broadcast %50 : vector<8x1xf32> to vector<8x8xf32>
    %52 = arith.mulf %47, %51 : vector<8x8xf32>
    %cst_20 = arith.constant dense<0.000000e+00> : vector<8x8xf32>
    %53 = tpu.matmul %52, %41, %cst_20 {dimension_numbers = #tpu.dot_dimension_numbers<[1], [0], [0], [1], [0, 0, 1, 1], [], []>} : vector<8x8xf32>, vector<8x8xf32>, vector<8x8xf32> -> vector<8x8xf32>
    %c0_21 = arith.constant 0 : index
    %c16 = arith.constant 16 : index
    %54 = vector.load %arg15[%c0_21, %c16] : memref<8x32xf32, #tpu.memory_space<vmem>>, vector<8x8xf32>
    tpu.vector_store %arg15[%c0_21, %c16], %53 {strides = array<i32>} : memref<8x32xf32, #tpu.memory_space<vmem>>, vector<8x8xf32>,
    %55 = vector.extract_strided_slice %6 {offsets = [0, 24], sizes = [8, 8], strides = [1, 1]} : vector<8x96xf32> to vector<8x8xf32>
    %56 = vector.extract_strided_slice %6 {offsets = [0, 56], sizes = [8, 8], strides = [1, 1]} : vector<8x96xf32> to vector<8x8xf32>
    %57 = vector.extract_strided_slice %6 {offsets = [0, 88], sizes = [8, 8], strides = [1, 1]} : vector<8x96xf32> to vector<8x8xf32>
    %cst_22 = arith.constant dense<0.000000e+00> : vector<8x8xf32>
    %58 = tpu.matmul %55, %56, %cst_22 {dimension_numbers = #tpu.dot_dimension_numbers<[1], [1], [0], [0], [0, 0, 1, 0], [], []>} : vector<8x8xf32>, vector<8x8xf32>, vector<8x8xf32> -> vector<8x8xf32>
    %cst_23 = arith.constant dense<0xFF800000> : vector<8xf32>
    %59 = vector.multi_reduction <maximumf>, %58, %cst_23 [1] : vector<8x8xf32> to vector<8xf32>
    %60 = vector.shape_cast %59 : vector<8xf32> to vector<8x1xf32>
    %61 = vector.broadcast %60 : vector<8x1xf32> to vector<8x8xf32>
    %62 = arith.subf %58, %61 : vector<8x8xf32>
    %63 = math.exp %62 : vector<8x8xf32>
    %cst_24 = arith.constant dense<0.000000e+00> : vector<8xf32>
    %64 = vector.multi_reduction <add>, %63, %cst_24 [1] : vector<8x8xf32> to vector<8xf32>
    %65 = vector.shape_cast %64 : vector<8xf32> to vector<8x1xf32>
    %66 = tpu.reciprocal %65 {approx = true} : vector<8x1xf32> -> vector<8x1xf32>
    %67 = vector.broadcast %66 : vector<8x1xf32> to vector<8x8xf32>
    %68 = arith.mulf %63, %67 : vector<8x8xf32>
    %cst_25 = arith.constant dense<0.000000e+00> : vector<8x8xf32>
    %69 = tpu.matmul %68, %57, %cst_25 {dimension_numbers = #tpu.dot_dimension_numbers<[1], [0], [0], [1], [0, 0, 1, 1], [], []>} : vector<8x8xf32>, vector<8x8xf32>, vector<8x8xf32> -> vector<8x8xf32>
    %c0_26 = arith.constant 0 : index
    %c24 = arith.constant 24 : index
    %70 = vector.load %arg15[%c0_26, %c24] : memref<8x32xf32, #tpu.memory_space<vmem>>, vector<8x8xf32>
    tpu.vector_store %arg15[%c0_26, %c24], %69 {strides = array<i32>} : memref<8x32xf32, #tpu.memory_space<vmem>>, vector<8x8xf32>,
    %c0_27 = arith.constant 0 : index
    %c0_28 = arith.constant 0 : index
    %71 = vector.load %arg15[%c0_27, %c0_28] : memref<8x32xf32, #tpu.memory_space<vmem>>, vector<8x32xf32>
    %c0_29 = arith.constant 0 : index
    %c0_30 = arith.constant 0 : index
    %72 = vector.load %arg4[%c0_29, %c0_30] : memref<32x32xf32, #tpu.memory_space<vmem>>, vector<32x32xf32>
    %cst_31 = arith.constant dense<0.000000e+00> : vector<8x32xf32>
    %73 = tpu.matmul %71, %72, %cst_31 {dimension_numbers = #tpu.dot_dimension_numbers<[1], [0], [0], [1], [0, 0, 1, 1], [], []>} : vector<8x32xf32>, vector<32x32xf32>, vector<8x32xf32> -> vector<8x32xf32>
    %c0_32 = arith.constant 0 : index
    %c0_33 = arith.constant 0 : index
    %74 = vector.load %arg5[%c0_32, %c0_33] : memref<1x32xf32, #tpu.memory_space<vmem>>, vector<1x32xf32>
    %75 = vector.broadcast %74 : vector<1x32xf32> to vector<8x32xf32>
    %76 = arith.addf %73, %75 : vector<8x32xf32>
    %77 = arith.addf %1, %76 : vector<8x32xf32>
    %c0_34 = arith.constant 0 : index
    %c0_35 = arith.constant 0 : index
    %78 = vector.load %arg6[%c0_34, %c0_35] : memref<1x32xf32, #tpu.memory_space<vmem>>, vector<1x32xf32>
    %c0_36 = arith.constant 0 : index
    %c0_37 = arith.constant 0 : index
    %79 = vector.load %arg7[%c0_36, %c0_37] : memref<1x32xf32, #tpu.memory_space<vmem>>, vector<1x32xf32>
    %cst_38 = arith.constant dense<0.000000e+00> : vector<8xf32>
    %80 = vector.multi_reduction <add>, %77, %cst_38 [1] : vector<8x32xf32> to vector<8xf32>
    %81 = vector.shape_cast %80 : vector<8xf32> to vector<8x1xf32>
    %cst_39 = arith.constant 3.200000e+01 : f32
    %82 = vector.broadcast %cst_39 : f32 to vector<8x1xf32>
    %83 = arith.divf %81, %82 : vector<8x1xf32>
    %84 = arith.mulf %77, %77 : vector<8x32xf32>
    %cst_40 = arith.constant dense<0.000000e+00> : vector<8xf32>
    %85 = vector.multi_reduction <add>, %84, %cst_40 [1] : vector<8x32xf32> to vector<8xf32>
    %86 = vector.shape_cast %85 : vector<8xf32> to vector<8x1xf32>
    %cst_41 = arith.constant 3.200000e+01 : f32
    %87 = vector.broadcast %cst_41 : f32 to vector<8x1xf32>
    %88 = arith.divf %86, %87 : vector<8x1xf32>
    %89 = arith.mulf %83, %83 : vector<8x1xf32>
    %90 = arith.subf %88, %89 : vector<8x1xf32>
    %cst_42 = arith.constant 0.000000e+00 : f32
    %91 = vector.broadcast %cst_42 : f32 to vector<8x1xf32>
    %92 = arith.maximumf %90, %91 : vector<8x1xf32>
    %93 = vector.broadcast %83 : vector<8x1xf32> to vector<8x32xf32>
    %94 = arith.subf %77, %93 : vector<8x32xf32>
    %cst_43 = arith.constant 9.99999974E-6 : f32
    %95 = vector.broadcast %cst_43 : f32 to vector<8x1xf32>
    %96 = arith.addf %92, %95 : vector<8x1xf32>
    %97 = math.rsqrt %96 : vector<8x1xf32>
    %98 = vector.broadcast %97 : vector<8x1xf32> to vector<8x32xf32>
    %99 = arith.mulf %94, %98 : vector<8x32xf32>
    %100 = vector.broadcast %78 : vector<1x32xf32> to vector<8x32xf32>
    %101 = arith.mulf %99, %100 : vector<8x32xf32>
    %102 = vector.broadcast %79 : vector<1x32xf32> to vector<8x32xf32>
    %103 = arith.addf %101, %102 : vector<8x32xf32>
    %c0_44 = arith.constant 0 : index
    %c0_45 = arith.constant 0 : index
    %104 = vector.load %arg8[%c0_44, %c0_45] : memref<32x64xf32, #tpu.memory_space<vmem>>, vector<32x64xf32>
    %cst_46 = arith.constant dense<0.000000e+00> : vector<8x64xf32>
    %105 = tpu.matmul %103, %104, %cst_46 {dimension_numbers = #tpu.dot_dimension_numbers<[1], [0], [0], [1], [0, 0, 1, 1], [], []>} : vector<8x32xf32>, vector<32x64xf32>, vector<8x64xf32> -> vector<8x64xf32>
    %c0_47 = arith.constant 0 : index
    %c0_48 = arith.constant 0 : index
    %106 = vector.load %arg9[%c0_47, %c0_48] : memref<1x64xf32, #tpu.memory_space<vmem>>, vector<1x64xf32>
    %107 = vector.broadcast %106 : vector<1x64xf32> to vector<8x64xf32>
    %108 = arith.addf %105, %107 : vector<8x64xf32>
    %cst_49 = arith.constant 0.000000e+00 : f32
    %109 = vector.broadcast %cst_49 : f32 to vector<8x64xf32>
    %110 = arith.maximumf %108, %109 : vector<8x64xf32>
    %c0_50 = arith.constant 0 : index
    %c0_51 = arith.constant 0 : index
    %111 = vector.load %arg10[%c0_50, %c0_51] : memref<64x32xf32, #tpu.memory_space<vmem>>, vector<64x32xf32>
    %cst_52 = arith.constant dense<0.000000e+00> : vector<8x32xf32>
    %112 = tpu.matmul %110, %111, %cst_52 {dimension_numbers = #tpu.dot_dimension_numbers<[1], [0], [0], [1], [0, 0, 1, 1], [], []>} : vector<8x64xf32>, vector<64x32xf32>, vector<8x32xf32> -> vector<8x32xf32>
    %c0_53 = arith.constant 0 : index
    %c0_54 = arith.constant 0 : index
    %113 = vector.load %arg11[%c0_53, %c0_54] : memref<1x32xf32, #tpu.memory_space<vmem>>, vector<1x32xf32>
    %114 = vector.broadcast %113 : vector<1x32xf32> to vector<8x32xf32>
    %115 = arith.addf %112, %114 : vector<8x32xf32>
    %116 = arith.addf %103, %115 : vector<8x32xf32>
    %c0_55 = arith.constant 0 : index
    %c0_56 = arith.constant 0 : index
    %117 = vector.load %arg12[%c0_55, %c0_56] : memref<1x32xf32, #tpu.memory_space<vmem>>, vector<1x32xf32>
    %c0_57 = arith.constant 0 : index
    %c0_58 = arith.constant 0 : index
    %118 = vector.load %arg13[%c0_57, %c0_58] : memref<1x32xf32, #tpu.memory_space<vmem>>, vector<1x32xf32>
    %cst_59 = arith.constant dense<0.000000e+00> : vector<8xf32>
    %119 = vector.multi_reduction <add>, %116, %cst_59 [1] : vector<8x32xf32> to vector<8xf32>
    %120 = vector.shape_cast %119 : vector<8xf32> to vector<8x1xf32>
    %cst_60 = arith.constant 3.200000e+01 : f32
    %121 = vector.broadcast %cst_60 : f32 to vector<8x1xf32>
    %122 = arith.divf %120, %121 : vector<8x1xf32>
    %123 = arith.mulf %116, %116 : vector<8x32xf32>
    %cst_61 = arith.constant dense<0.000000e+00> : vector<8xf32>
    %124 = vector.multi_reduction <add>, %123, %cst_61 [1] : vector<8x32xf32> to vector<8xf32>
    %125 = vector.shape_cast %124 : vector<8xf32> to vector<8x1xf32>
    %cst_62 = arith.constant 3.200000e+01 : f32
    %126 = vector.broadcast %cst_62 : f32 to vector<8x1xf32>
    %127 = arith.divf %125, %126 : vector<8x1xf32>
    %128 = arith.mulf %122, %122 : vector<8x1xf32>
    %129 = arith.subf %127, %128 : vector<8x1xf32>
    %cst_63 = arith.constant 0.000000e+00 : f32
    %130 = vector.broadcast %cst_63 : f32 to vector<8x1xf32>
    %131 = arith.maximumf %129, %130 : vector<8x1xf32>
    %132 = vector.broadcast %122 : vector<8x1xf32> to vector<8x32xf32>
    %133 = arith.subf %116, %132 : vector<8x32xf32>
    %cst_64 = arith.constant 9.99999974E-6 : f32
    %134 = vector.broadcast %cst_64 : f32 to vector<8x1xf32>
    %135 = arith.addf %131, %134 : vector<8x1xf32>
    %136 = math.rsqrt %135 : vector<8x1xf32>
    %137 = vector.broadcast %136 : vector<8x1xf32> to vector<8x32xf32>
    %138 = arith.mulf %133, %137 : vector<8x32xf32>
    %139 = vector.broadcast %117 : vector<1x32xf32> to vector<8x32xf32>
    %140 = arith.mulf %138, %139 : vector<8x32xf32>
    %141 = vector.broadcast %118 : vector<1x32xf32> to vector<8x32xf32>
    %142 = arith.addf %140, %141 : vector<8x32xf32>
    %c0_65 = arith.constant 0 : index
    %c0_66 = arith.constant 0 : index
    %c0_67 = arith.constant 0 : index
    %143 = vector.load %arg14[%c0_65, %c0_66, %c0_67] : memref<1x8x32xf32, #tpu.memory_space<vmem>>, vector<1x8x32xf32>
    %144 = vector.shape_cast %143 : vector<1x8x32xf32> to vector<8x32xf32>
    %145 = vector.shape_cast %142 : vector<8x32xf32> to vector<1x8x32xf32>
    tpu.vector_store %arg14[%c0_65, %c0_66, %c0_67], %145 {strides = array<i32>} : memref<1x8x32xf32, #tpu.memory_space<vmem>>, vector<1x8x32xf32>,
    return
  }
  func.func @transform_0(%arg0: i32) -> (i32, i32, i32) {
    %c0_i32 = arith.constant 0 : i32
    %c0_i32_0 = arith.constant 0 : i32
    %c0_i32_1 = arith.constant 0 : i32
    return %arg0, %c0_i32, %c0_i32_0 : i32, i32, i32
  }
  func.func @transform_1(%arg0: i32) -> (i32, i32) {
    %c0_i32 = arith.constant 0 : i32
    %c0_i32_0 = arith.constant 0 : i32
    %c0_i32_1 = arith.constant 0 : i32
    return %c0_i32, %c0_i32_0 : i32, i32
  }
  func.func @transform_2(%arg0: i32) -> (i32, i32) {
    %c0_i32 = arith.constant 0 : i32
    %c0_i32_0 = arith.constant 0 : i32
    %c0_i32_1 = arith.constant 0 : i32
    return %c0_i32, %c0_i32_0 : i32, i32
  }
  func.func @transform_3(%arg0: i32) -> (i32, i32) {
    %c0_i32 = arith.constant 0 : i32
    %c0_i32_0 = arith.constant 0 : i32
    %c0_i32_1 = arith.constant 0 : i32
    return %c0_i32, %c0_i32_0 : i32, i32
  }
  func.func @transform_4(%arg0: i32) -> (i32, i32) {
    %c0_i32 = arith.constant 0 : i32
    %c0_i32_0 = arith.constant 0 : i32
    %c0_i32_1 = arith.constant 0 : i32
    return %c0_i32, %c0_i32_0 : i32, i32
  }
  func.func @transform_5(%arg0: i32) -> (i32, i32) {
    %c0_i32 = arith.constant 0 : i32
    %c0_i32_0 = arith.constant 0 : i32
    %c0_i32_1 = arith.constant 0 : i32
    return %c0_i32, %c0_i32_0 : i32, i32
  }
  func.func @transform_6(%arg0: i32) -> (i32, i32) {
    %c0_i32 = arith.constant 0 : i32
    %c0_i32_0 = arith.constant 0 : i32
    %c0_i32_1 = arith.constant 0 : i32
    return %c0_i32, %c0_i32_0 : i32, i32
  }
  func.func @transform_7(%arg0: i32) -> (i32, i32) {
    %c0_i32 = arith.constant 0 : i32
    %c0_i32_0 = arith.constant 0 : i32
    %c0_i32_1 = arith.constant 0 : i32
    return %c0_i32, %c0_i32_0 : i32, i32
  }
  func.func @transform_8(%arg0: i32) -> (i32, i32) {
    %c0_i32 = arith.constant 0 : i32
    %c0_i32_0 = arith.constant 0 : i32
    %c0_i32_1 = arith.constant 0 : i32
    return %c0_i32, %c0_i32_0 : i32, i32
  }
  func.func @transform_9(%arg0: i32) -> (i32, i32) {
    %c0_i32 = arith.constant 0 : i32
    %c0_i32_0 = arith.constant 0 : i32
    %c0_i32_1 = arith.constant 0 : i32
    return %c0_i32, %c0_i32_0 : i32, i32
  }
  func.func @transform_10(%arg0: i32) -> (i32, i32) {
    %c0_i32 = arith.constant 0 : i32
    %c0_i32_0 = arith.constant 0 : i32
    %c0_i32_1 = arith.constant 0 : i32
    return %c0_i32, %c0_i32_0 : i32, i32
  }
  func.func @transform_11(%arg0: i32) -> (i32, i32) {
    %c0_i32 = arith.constant 0 : i32
    %c0_i32_0 = arith.constant 0 : i32
    %c0_i32_1 = arith.constant 0 : i32
    return %c0_i32, %c0_i32_0 : i32, i32
  }
  func.func @transform_12(%arg0: i32) -> (i32, i32) {
    %c0_i32 = arith.constant 0 : i32
    %c0_i32_0 = arith.constant 0 : i32
    %c0_i32_1 = arith.constant 0 : i32
    return %c0_i32, %c0_i32_0 : i32, i32
  }
  func.func @transform_13(%arg0: i32) -> (i32, i32, i32) {
    %c0_i32 = arith.constant 0 : i32
    %c0_i32_0 = arith.constant 0 : i32
    %c0_i32_1 = arith.constant 0 : i32
    return %arg0, %c0_i32, %c0_i32_0 : i32, i32, i32
  }
}

module attributes {stable_mosaic.version = 11 : i64} {
  func.func @_transformer_block_kernel(%arg0: i32, %arg1: memref<1x8x32xf32, #tpu.memory_space<vmem>>, %arg2: memref<32x96xf32, #tpu.memory_space<vmem>>, %arg3: memref<1x96xf32, #tpu.memory_space<vmem>>, %arg4: memref<32x32xf32, #tpu.memory_space<vmem>>, %arg5: memref<1x32xf32, #tpu.memory_space<vmem>>, %arg6: memref<1x32xf32, #tpu.memory_space<vmem>>, %arg7: memref<1x32xf32, #tpu.memory_space<vmem>>, %arg8: memref<32x64xf32, #tpu.memory_space<vmem>>, %arg9: memref<1x64xf32, #tpu.memory_space<vmem>>, %arg10: memref<64x32xf32, #tpu.memory_space<vmem>>, %arg11: memref<1x32xf32, #tpu.memory_space<vmem>>, %arg12: memref<1x32xf32, #tpu.memory_space<vmem>>, %arg13: memref<1x32xf32, #tpu.memory_space<vmem>>, %arg14: memref<1x8x32xf32, #tpu.memory_space<vmem>>, %arg15: memref<8x32xf32, #tpu.memory_space<vmem>>) attributes {dimension_semantics = [#tpu.dimension_semantics<parallel>], iteration_bounds = array<i64: 2>, scalar_prefetch = 0 : i64, scratch_operands = 1 : i64, tpu.core_type = #tpu.core_type<tc>, window_params = [{transform_indices = @transform_0, window_bounds = array<i64: 1, 8, 32>}, {pipeline_mode = #tpu.pipeline_mode<synchronous>, transform_indices = @transform_1, window_bounds = array<i64: 32, 96>}, {pipeline_mode = #tpu.pipeline_mode<synchronous>, transform_indices = @transform_2, window_bounds = array<i64: 1, 96>}, {pipeline_mode = #tpu.pipeline_mode<synchronous>, transform_indices = @transform_3, window_bounds = array<i64: 32, 32>}, {pipeline_mode = #tpu.pipeline_mode<synchronous>, transform_indices = @transform_4, window_bounds = array<i64: 1, 32>}, {pipeline_mode = #tpu.pipeline_mode<synchronous>, transform_indices = @transform_5, window_bounds = array<i64: 1, 32>}, {pipeline_mode = #tpu.pipeline_mode<synchronous>, transform_indices = @transform_6, window_bounds = array<i64: 1, 32>}, {pipeline_mode = #tpu.pipeline_mode<synchronous>, transform_indices = @transform_7, window_bounds = array<i64: 32, 64>}, {pipeline_mode = #tpu.pipeline_mode<synchronous>, transform_indices = @transform_8, window_bounds = array<i64: 1, 64>}, {pipeline_mode = #tpu.pipeline_mode<synchronous>, transform_indices = @transform_9, window_bounds = array<i64: 64, 32>}, {pipeline_mode = #tpu.pipeline_mode<synchronous>, transform_indices = @transform_10, window_bounds = array<i64: 1, 32>}, {pipeline_mode = #tpu.pipeline_mode<synchronous>, transform_indices = @transform_11, window_bounds = array<i64: 1, 32>}, {pipeline_mode = #tpu.pipeline_mode<synchronous>, transform_indices = @transform_12, window_bounds = array<i64: 1, 32>}, {transform_indices = @transform_13, window_bounds = array<i64: 1, 8, 32>}]} {
    %c0 = arith.constant 0 : index
    %c0_0 = arith.constant 0 : index
    %c0_1 = arith.constant 0 : index
    %0 = vector.load %arg1[%c0, %c0_0, %c0_1] : memref<1x8x32xf32, #tpu.memory_space<vmem>>, vector<1x8x32xf32>
    %1 = vector.shape_cast %0 : vector<1x8x32xf32> to vector<8x32xf32>
    %c0_2 = arith.constant 0 : index
    %c0_3 = arith.constant 0 : index
    %2 = vector.load %arg2[%c0_2, %c0_3] : memref<32x96xf32, #tpu.memory_space<vmem>>, vector<32x96xf32>
    %cst = arith.constant dense<0.000000e+00> : vector<8x96xf32>
    %3 = tpu.matmul %1, %2, %cst {dimension_numbers = #tpu.dot_dimension_numbers<[1], [0], [0], [1], [0, 0, 1, 1], [], []>} : vector<8x32xf32>, vector<32x96xf32>, vector<8x96xf32> -> vector<8x96xf32>
    %c0_4 = arith.constant 0 : index
    %c0_5 = arith.constant 0 : index
    %4 = vector.load %arg3[%c0_4, %c0_5] : memref<1x96xf32, #tpu.memory_space<vmem>>, vector<1x96xf32>
    %5 = vector.broadcast %4 : vector<1x96xf32> to vector<8x96xf32>
    %6 = arith.addf %3, %5 : vector<8x96xf32>
    %7 = vector.extract_strided_slice %6 {offsets = [0, 0], sizes = [8, 8], strides = [1, 1]} : vector<8x96xf32> to vector<8x8xf32>
    %8 = vector.extract_strided_slice %6 {offsets = [0, 32], sizes = [8, 8], strides = [1, 1]} : vector<8x96xf32> to vector<8x8xf32>
    %9 = vector.extract_strided_slice %6 {offsets = [0, 64], sizes = [8, 8], strides = [1, 1]} : vector<8x96xf32> to vector<8x8xf32>
    %cst_6 = arith.constant dense<0.000000e+00> : vector<8x8xf32>
    %10 = tpu.matmul %7, %8, %cst_6 {dimension_numbers = #tpu.dot_dimension_numbers<[1], [1], [0], [0], [0, 0, 1, 0], [], []>} : vector<8x8xf32>, vector<8x8xf32>, vector<8x8xf32> -> vector<8x8xf32>
    %cst_7 = arith.constant dense<0xFF800000> : vector<8xf32>
    %11 = vector.multi_reduction <maximumf>, %10, %cst_7 [1] : vector<8x8xf32> to vector<8xf32>
    %12 = vector.shape_cast %11 : vector<8xf32> to vector<8x1xf32>
    %13 = vector.broadcast %12 : vector<8x1xf32> to vector<8x8xf32>
    %14 = arith.subf %10, %13 : vector<8x8xf32>
    %15 = math.exp %14 : vector<8x8xf32>
    %cst_8 = arith.constant dense<0.000000e+00> : vector<8xf32>
    %16 = vector.multi_reduction <add>, %15, %cst_8 [1] : vector<8x8xf32> to vector<8xf32>
    %17 = vector.shape_cast %16 : vector<8xf32> to vector<8x1xf32>
    %18 = tpu.reciprocal %17 {approx = true} : vector<8x1xf32> -> vector<8x1xf32>
    %19 = vector.broadcast %18 : vector<8x1xf32> to vector<8x8xf32>
    %20 = arith.mulf %15, %19 : vector<8x8xf32>
    %cst_9 = arith.constant dense<0.000000e+00> : vector<8x8xf32>
    %21 = tpu.matmul %20, %9, %cst_9 {dimension_numbers = #tpu.dot_dimension_numbers<[1], [0], [0], [1], [0, 0, 1, 1], [], []>} : vector<8x8xf32>, vector<8x8xf32>, vector<8x8xf32> -> vector<8x8xf32>
    %c0_10 = arith.constant 0 : index
    %c0_11 = arith.constant 0 : index
    %22 = vector.load %arg15[%c0_10, %c0_11] : memref<8x32xf32, #tpu.memory_space<vmem>>, vector<8x8xf32>
    tpu.vector_store %arg15[%c0_10, %c0_11], %21 {strides = array<i32>} : memref<8x32xf32, #tpu.memory_space<vmem>>, vector<8x8xf32>,
    %23 = vector.extract_strided_slice %6 {offsets = [0, 8], sizes = [8, 8], strides = [1, 1]} : vector<8x96xf32> to vector<8x8xf32>
    %24 = vector.extract_strided_slice %6 {offsets = [0, 40], sizes = [8, 8], strides = [1, 1]} : vector<8x96xf32> to vector<8x8xf32>
    %25 = vector.extract_strided_slice %6 {offsets = [0, 72], sizes = [8, 8], strides = [1, 1]} : vector<8x96xf32> to vector<8x8xf32>
    %cst_12 = arith.constant dense<0.000000e+00> : vector<8x8xf32>
    %26 = tpu.matmul %23, %24, %cst_12 {dimension_numbers = #tpu.dot_dimension_numbers<[1], [1], [0], [0], [0, 0, 1, 0], [], []>} : vector<8x8xf32>, vector<8x8xf32>, vector<8x8xf32> -> vector<8x8xf32>
    %cst_13 = arith.constant dense<0xFF800000> : vector<8xf32>
    %27 = vector.multi_reduction <maximumf>, %26, %cst_13 [1] : vector<8x8xf32> to vector<8xf32>
    %28 = vector.shape_cast %27 : vector<8xf32> to vector<8x1xf32>
    %29 = vector.broadcast %28 : vector<8x1xf32> to vector<8x8xf32>
    %30 = arith.subf %26, %29 : vector<8x8xf32>
    %31 = math.exp %30 : vector<8x8xf32>
    %cst_14 = arith.constant dense<0.000000e+00> : vector<8xf32>
    %32 = vector.multi_reduction <add>, %31, %cst_14 [1] : vector<8x8xf32> to vector<8xf32>
    %33 = vector.shape_cast %32 : vector<8xf32> to vector<8x1xf32>
    %34 = tpu.reciprocal %33 {approx = true} : vector<8x1xf32> -> vector<8x1xf32>
    %35 = vector.broadcast %34 : vector<8x1xf32> to vector<8x8xf32>
    %36 = arith.mulf %31, %35 : vector<8x8xf32>
    %cst_15 = arith.constant dense<0.000000e+00> : vector<8x8xf32>
    %37 = tpu.matmul %36, %25, %cst_15 {dimension_numbers = #tpu.dot_dimension_numbers<[1], [0], [0], [1], [0, 0, 1, 1], [], []>} : vector<8x8xf32>, vector<8x8xf32>, vector<8x8xf32> -> vector<8x8xf32>
    %c0_16 = arith.constant 0 : index
    %c8 = arith.constant 8 : index
    %38 = vector.load %arg15[%c0_16, %c8] : memref<8x32xf32, #tpu.memory_space<vmem>>, vector<8x8xf32>
    tpu.vector_store %arg15[%c0_16, %c8], %37 {strides = array<i32>} : memref<8x32xf32, #tpu.memory_space<vmem>>, vector<8x8xf32>,
    %39 = vector.extract_strided_slice %6 {offsets = [0, 16], sizes = [8, 8], strides = [1, 1]} : vector<8x96xf32> to vector<8x8xf32>
    %40 = vector.extract_strided_slice %6 {offsets = [0, 48], sizes = [8, 8], strides = [1, 1]} : vector<8x96xf32> to vector<8x8xf32>
    %41 = vector.extract_strided_slice %6 {offsets = [0, 80], sizes = [8, 8], strides = [1, 1]} : vector<8x96xf32> to vector<8x8xf32>
    %cst_17 = arith.constant dense<0.000000e+00> : vector<8x8xf32>
    %42 = tpu.matmul %39, %40, %cst_17 {dimension_numbers = #tpu.dot_dimension_numbers<[1], [1], [0], [0], [0, 0, 1, 0], [], []>} : vector<8x8xf32>, vector<8x8xf32>, vector<8x8xf32> -> vector<8x8xf32>
    %cst_18 = arith.constant dense<0xFF800000> : vector<8xf32>
    %43 = vector.multi_reduction <maximumf>, %42, %cst_18 [1] : vector<8x8xf32> to vector<8xf32>
    %44 = vector.shape_cast %43 : vector<8xf32> to vector<8x1xf32>
    %45 = vector.broadcast %44 : vector<8x1xf32> to vector<8x8xf32>
    %46 = arith.subf %42, %45 : vector<8x8xf32>
    %47 = math.exp %46 : vector<8x8xf32>
    %cst_19 = arith.constant dense<0.000000e+00> : vector<8xf32>
    %48 = vector.multi_reduction <add>, %47, %cst_19 [1] : vector<8x8xf32> to vector<8xf32>
    %49 = vector.shape_cast %48 : vector<8xf32> to vector<8x1xf32>
    %50 = tpu.reciprocal %49 {approx = true} : vector<8x1xf32> -> vector<8x1xf32>
    %51 = vector.broadcast %50 : vector<8x1xf32> to vector<8x8xf32>
    %52 = arith.mulf %47, %51 : vector<8x8xf32>
    %cst_20 = arith.constant dense<0.000000e+00> : vector<8x8xf32>
    %53 = tpu.matmul %52, %41, %cst_20 {dimension_numbers = #tpu.dot_dimension_numbers<[1], [0], [0], [1], [0, 0, 1, 1], [], []>} : vector<8x8xf32>, vector<8x8xf32>, vector<8x8xf32> -> vector<8x8xf32>
    %c0_21 = arith.constant 0 : index
    %c16 = arith.constant 16 : index
    %54 = vector.load %arg15[%c0_21, %c16] : memref<8x32xf32, #tpu.memory_space<vmem>>, vector<8x8xf32>
    tpu.vector_store %arg15[%c0_21, %c16], %53 {strides = array<i32>} : memref<8x32xf32, #tpu.memory_space<vmem>>, vector<8x8xf32>,
    %55 = vector.extract_strided_slice %6 {offsets = [0, 24], sizes = [8, 8], strides = [1, 1]} : vector<8x96xf32> to vector<8x8xf32>
    %56 = vector.extract_strided_slice %6 {offsets = [0, 56], sizes = [8, 8], strides = [1, 1]} : vector<8x96xf32> to vector<8x8xf32>
    %57 = vector.extract_strided_slice %6 {offsets = [0, 88], sizes = [8, 8], strides = [1, 1]} : vector<8x96xf32> to vector<8x8xf32>
    %cst_22 = arith.constant dense<0.000000e+00> : vector<8x8xf32>
    %58 = tpu.matmul %55, %56, %cst_22 {dimension_numbers = #tpu.dot_dimension_numbers<[1], [1], [0], [0], [0, 0, 1, 0], [], []>} : vector<8x8xf32>, vector<8x8xf32>, vector<8x8xf32> -> vector<8x8xf32>
    %cst_23 = arith.constant dense<0xFF800000> : vector<8xf32>
    %59 = vector.multi_reduction <maximumf>, %58, %cst_23 [1] : vector<8x8xf32> to vector<8xf32>
    %60 = vector.shape_cast %59 : vector<8xf32> to vector<8x1xf32>
    %61 = vector.broadcast %60 : vector<8x1xf32> to vector<8x8xf32>
    %62 = arith.subf %58, %61 : vector<8x8xf32>
    %63 = math.exp %62 : vector<8x8xf32>
    %cst_24 = arith.constant dense<0.000000e+00> : vector<8xf32>
    %64 = vector.multi_reduction <add>, %63, %cst_24 [1] : vector<8x8xf32> to vector<8xf32>
    %65 = vector.shape_cast %64 : vector<8xf32> to vector<8x1xf32>
    %66 = tpu.reciprocal %65 {approx = true} : vector<8x1xf32> -> vector<8x1xf32>
    %67 = vector.broadcast %66 : vector<8x1xf32> to vector<8x8xf32>
    %68 = arith.mulf %63, %67 : vector<8x8xf32>
    %cst_25 = arith.constant dense<0.000000e+00> : vector<8x8xf32>
    %69 = tpu.matmul %68, %57, %cst_25 {dimension_numbers = #tpu.dot_dimension_numbers<[1], [0], [0], [1], [0, 0, 1, 1], [], []>} : vector<8x8xf32>, vector<8x8xf32>, vector<8x8xf32> -> vector<8x8xf32>
    %c0_26 = arith.constant 0 : index
    %c24 = arith.constant 24 : index
    %70 = vector.load %arg15[%c0_26, %c24] : memref<8x32xf32, #tpu.memory_space<vmem>>, vector<8x8xf32>
    tpu.vector_store %arg15[%c0_26, %c24], %69 {strides = array<i32>} : memref<8x32xf32, #tpu.memory_space<vmem>>, vector<8x8xf32>,
    %c0_27 = arith.constant 0 : index
    %c0_28 = arith.constant 0 : index
    %71 = vector.load %arg15[%c0_27, %c0_28] : memref<8x32xf32, #tpu.memory_space<vmem>>, vector<8x32xf32>
    %c0_29 = arith.constant 0 : index
    %c0_30 = arith.constant 0 : index
    %72 = vector.load %arg4[%c0_29, %c0_30] : memref<32x32xf32, #tpu.memory_space<vmem>>, vector<32x32xf32>
    %cst_31 = arith.constant dense<0.000000e+00> : vector<8x32xf32>
    %73 = tpu.matmul %71, %72, %cst_31 {dimension_numbers = #tpu.dot_dimension_numbers<[1], [0], [0], [1], [0, 0, 1, 1], [], []>} : vector<8x32xf32>, vector<32x32xf32>, vector<8x32xf32> -> vector<8x32xf32>
    %c0_32 = arith.constant 0 : index
    %c0_33 = arith.constant 0 : index
    %74 = vector.load %arg5[%c0_32, %c0_33] : memref<1x32xf32, #tpu.memory_space<vmem>>, vector<1x32xf32>
    %75 = vector.broadcast %74 : vector<1x32xf32> to vector<8x32xf32>
    %76 = arith.addf %73, %75 : vector<8x32xf32>
    %77 = arith.addf %1, %76 : vector<8x32xf32>
    %c0_34 = arith.constant 0 : index
    %c0_35 = arith.constant 0 : index
    %78 = vector.load %arg6[%c0_34, %c0_35] : memref<1x32xf32, #tpu.memory_space<vmem>>, vector<1x32xf32>
    %c0_36 = arith.constant 0 : index
    %c0_37 = arith.constant 0 : index
    %79 = vector.load %arg7[%c0_36, %c0_37] : memref<1x32xf32, #tpu.memory_space<vmem>>, vector<1x32xf32>
    %cst_38 = arith.constant dense<0.000000e+00> : vector<8xf32>
    %80 = vector.multi_reduction <add>, %77, %cst_38 [1] : vector<8x32xf32> to vector<8xf32>
    %81 = vector.shape_cast %80 : vector<8xf32> to vector<8x1xf32>
    %cst_39 = arith.constant 3.200000e+01 : f32
    %82 = vector.broadcast %cst_39 : f32 to vector<8x1xf32>
    %83 = arith.divf %81, %82 : vector<8x1xf32>
    %84 = arith.mulf %77, %77 : vector<8x32xf32>
    %cst_40 = arith.constant dense<0.000000e+00> : vector<8xf32>
    %85 = vector.multi_reduction <add>, %84, %cst_40 [1] : vector<8x32xf32> to vector<8xf32>
    %86 = vector.shape_cast %85 : vector<8xf32> to vector<8x1xf32>
    %cst_41 = arith.constant 3.200000e+01 : f32
    %87 = vector.broadcast %cst_41 : f32 to vector<8x1xf32>
    %88 = arith.divf %86, %87 : vector<8x1xf32>
    %89 = arith.mulf %83, %83 : vector<8x1xf32>
    %90 = arith.subf %88, %89 : vector<8x1xf32>
    %cst_42 = arith.constant 0.000000e+00 : f32
    %91 = vector.broadcast %cst_42 : f32 to vector<8x1xf32>
    %92 = arith.maximumf %90, %91 : vector<8x1xf32>
    %93 = vector.broadcast %83 : vector<8x1xf32> to vector<8x32xf32>
    %94 = arith.subf %77, %93 : vector<8x32xf32>
    %cst_43 = arith.constant 9.99999974E-6 : f32
    %95 = vector.broadcast %cst_43 : f32 to vector<8x1xf32>
    %96 = arith.addf %92, %95 : vector<8x1xf32>
    %97 = math.rsqrt %96 : vector<8x1xf32>
    %98 = vector.broadcast %97 : vector<8x1xf32> to vector<8x32xf32>
    %99 = arith.mulf %94, %98 : vector<8x32xf32>
    %100 = vector.broadcast %78 : vector<1x32xf32> to vector<8x32xf32>
    %101 = arith.mulf %99, %100 : vector<8x32xf32>
    %102 = vector.broadcast %79 : vector<1x32xf32> to vector<8x32xf32>
    %103 = arith.addf %101, %102 : vector<8x32xf32>
    %c0_44 = arith.constant 0 : index
    %c0_45 = arith.constant 0 : index
    %104 = vector.load %arg8[%c0_44, %c0_45] : memref<32x64xf32, #tpu.memory_space<vmem>>, vector<32x64xf32>
    %cst_46 = arith.constant dense<0.000000e+00> : vector<8x64xf32>
    %105 = tpu.matmul %103, %104, %cst_46 {dimension_numbers = #tpu.dot_dimension_numbers<[1], [0], [0], [1], [0, 0, 1, 1], [], []>} : vector<8x32xf32>, vector<32x64xf32>, vector<8x64xf32> -> vector<8x64xf32>
    %c0_47 = arith.constant 0 : index
    %c0_48 = arith.constant 0 : index
    %106 = vector.load %arg9[%c0_47, %c0_48] : memref<1x64xf32, #tpu.memory_space<vmem>>, vector<1x64xf32>
    %107 = vector.broadcast %106 : vector<1x64xf32> to vector<8x64xf32>
    %108 = arith.addf %105, %107 : vector<8x64xf32>
    %cst_49 = arith.constant 0.000000e+00 : f32
    %109 = vector.broadcast %cst_49 : f32 to vector<8x64xf32>
    %110 = arith.maximumf %108, %109 : vector<8x64xf32>
    %c0_50 = arith.constant 0 : index
    %c0_51 = arith.constant 0 : index
    %111 = vector.load %arg10[%c0_50, %c0_51] : memref<64x32xf32, #tpu.memory_space<vmem>>, vector<64x32xf32>
    %cst_52 = arith.constant dense<0.000000e+00> : vector<8x32xf32>
    %112 = tpu.matmul %110, %111, %cst_52 {dimension_numbers = #tpu.dot_dimension_numbers<[1], [0], [0], [1], [0, 0, 1, 1], [], []>} : vector<8x64xf32>, vector<64x32xf32>, vector<8x32xf32> -> vector<8x32xf32>
    %c0_53 = arith.constant 0 : index
    %c0_54 = arith.constant 0 : index
    %113 = vector.load %arg11[%c0_53, %c0_54] : memref<1x32xf32, #tpu.memory_space<vmem>>, vector<1x32xf32>
    %114 = vector.broadcast %113 : vector<1x32xf32> to vector<8x32xf32>
    %115 = arith.addf %112, %114 : vector<8x32xf32>
    %116 = arith.addf %103, %115 : vector<8x32xf32>
    %c0_55 = arith.constant 0 : index
    %c0_56 = arith.constant 0 : index
    %117 = vector.load %arg12[%c0_55, %c0_56] : memref<1x32xf32, #tpu.memory_space<vmem>>, vector<1x32xf32>
    %c0_57 = arith.constant 0 : index
    %c0_58 = arith.constant 0 : index
    %118 = vector.load %arg13[%c0_57, %c0_58] : memref<1x32xf32, #tpu.memory_space<vmem>>, vector<1x32xf32>
    %cst_59 = arith.constant dense<0.000000e+00> : vector<8xf32>
    %119 = vector.multi_reduction <add>, %116, %cst_59 [1] : vector<8x32xf32> to vector<8xf32>
    %120 = vector.shape_cast %119 : vector<8xf32> to vector<8x1xf32>
    %cst_60 = arith.constant 3.200000e+01 : f32
    %121 = vector.broadcast %cst_60 : f32 to vector<8x1xf32>
    %122 = arith.divf %120, %121 : vector<8x1xf32>
    %123 = arith.mulf %116, %116 : vector<8x32xf32>
    %cst_61 = arith.constant dense<0.000000e+00> : vector<8xf32>
    %124 = vector.multi_reduction <add>, %123, %cst_61 [1] : vector<8x32xf32> to vector<8xf32>
    %125 = vector.shape_cast %124 : vector<8xf32> to vector<8x1xf32>
    %cst_62 = arith.constant 3.200000e+01 : f32
    %126 = vector.broadcast %cst_62 : f32 to vector<8x1xf32>
    %127 = arith.divf %125, %126 : vector<8x1xf32>
    %128 = arith.mulf %122, %122 : vector<8x1xf32>
    %129 = arith.subf %127, %128 : vector<8x1xf32>
    %cst_63 = arith.constant 0.000000e+00 : f32
    %130 = vector.broadcast %cst_63 : f32 to vector<8x1xf32>
    %131 = arith.maximumf %129, %130 : vector<8x1xf32>
    %132 = vector.broadcast %122 : vector<8x1xf32> to vector<8x32xf32>
    %133 = arith.subf %116, %132 : vector<8x32xf32>
    %cst_64 = arith.constant 9.99999974E-6 : f32
    %134 = vector.broadcast %cst_64 : f32 to vector<8x1xf32>
    %135 = arith.addf %131, %134 : vector<8x1xf32>
    %136 = math.rsqrt %135 : vector<8x1xf32>
    %137 = vector.broadcast %136 : vector<8x1xf32> to vector<8x32xf32>
    %138 = arith.mulf %133, %137 : vector<8x32xf32>
    %139 = vector.broadcast %117 : vector<1x32xf32> to vector<8x32xf32>
    %140 = arith.mulf %138, %139 : vector<8x32xf32>
    %141 = vector.broadcast %118 : vector<1x32xf32> to vector<8x32xf32>
    %142 = arith.addf %140, %141 : vector<8x32xf32>
    %c0_65 = arith.constant 0 : index
    %c0_66 = arith.constant 0 : index
    %c0_67 = arith.constant 0 : index
    %143 = vector.load %arg14[%c0_65, %c0_66, %c0_67] : memref<1x8x32xf32, #tpu.memory_space<vmem>>, vector<1x8x32xf32>
    %144 = vector.shape_cast %143 : vector<1x8x32xf32> to vector<8x32xf32>
    %145 = vector.shape_cast %142 : vector<8x32xf32> to vector<1x8x32xf32>
    tpu.vector_store %arg14[%c0_65, %c0_66, %c0_67], %145 {strides = array<i32>} : memref<1x8x32xf32, #tpu.memory_space<vmem>>, vector<1x8x32xf32>,
    return
  }
  func.func @transform_0(%arg0: i32) -> (i32, i32, i32) {
    %c0_i32 = arith.constant 0 : i32
    %c0_i32_0 = arith.constant 0 : i32
    %c0_i32_1 = arith.constant 0 : i32
    return %arg0, %c0_i32, %c0_i32_0 : i32, i32, i32
  }
  func.func @transform_1(%arg0: i32) -> (i32, i32) {
    %c0_i32 = arith.constant 0 : i32
    %c0_i32_0 = arith.constant 0 : i32
    %c0_i32_1 = arith.constant 0 : i32
    return %c0_i32, %c0_i32_0 : i32, i32
  }
  func.func @transform_2(%arg0: i32) -> (i32, i32) {
    %c0_i32 = arith.constant 0 : i32
    %c0_i32_0 = arith.constant 0 : i32
    %c0_i32_1 = arith.constant 0 : i32
    return %c0_i32, %c0_i32_0 : i32, i32
  }
  func.func @transform_3(%arg0: i32) -> (i32, i32) {
    %c0_i32 = arith.constant 0 : i32
    %c0_i32_0 = arith.constant 0 : i32
    %c0_i32_1 = arith.constant 0 : i32
    return %c0_i32, %c0_i32_0 : i32, i32
  }
  func.func @transform_4(%arg0: i32) -> (i32, i32) {
    %c0_i32 = arith.constant 0 : i32
    %c0_i32_0 = arith.constant 0 : i32
    %c0_i32_1 = arith.constant 0 : i32
    return %c0_i32, %c0_i32_0 : i32, i32
  }
  func.func @transform_5(%arg0: i32) -> (i32, i32) {
    %c0_i32 = arith.constant 0 : i32
    %c0_i32_0 = arith.constant 0 : i32
    %c0_i32_1 = arith.constant 0 : i32
    return %c0_i32, %c0_i32_0 : i32, i32
  }
  func.func @transform_6(%arg0: i32) -> (i32, i32) {
    %c0_i32 = arith.constant 0 : i32
    %c0_i32_0 = arith.constant 0 : i32
    %c0_i32_1 = arith.constant 0 : i32
    return %c0_i32, %c0_i32_0 : i32, i32
  }
  func.func @transform_7(%arg0: i32) -> (i32, i32) {
    %c0_i32 = arith.constant 0 : i32
    %c0_i32_0 = arith.constant 0 : i32
    %c0_i32_1 = arith.constant 0 : i32
    return %c0_i32, %c0_i32_0 : i32, i32
  }
  func.func @transform_8(%arg0: i32) -> (i32, i32) {
    %c0_i32 = arith.constant 0 : i32
    %c0_i32_0 = arith.constant 0 : i32
    %c0_i32_1 = arith.constant 0 : i32
    return %c0_i32, %c0_i32_0 : i32, i32
  }
  func.func @transform_9(%arg0: i32) -> (i32, i32) {
    %c0_i32 = arith.constant 0 : i32
    %c0_i32_0 = arith.constant 0 : i32
    %c0_i32_1 = arith.constant 0 : i32
    return %c0_i32, %c0_i32_0 : i32, i32
  }
  func.func @transform_10(%arg0: i32) -> (i32, i32) {
    %c0_i32 = arith.constant 0 : i32
    %c0_i32_0 = arith.constant 0 : i32
    %c0_i32_1 = arith.constant 0 : i32
    return %c0_i32, %c0_i32_0 : i32, i32
  }
  func.func @transform_11(%arg0: i32) -> (i32, i32) {
    %c0_i32 = arith.constant 0 : i32
    %c0_i32_0 = arith.constant 0 : i32
    %c0_i32_1 = arith.constant 0 : i32
    return %c0_i32, %c0_i32_0 : i32, i32
  }
  func.func @transform_12(%arg0: i32) -> (i32, i32) {
    %c0_i32 = arith.constant 0 : i32
    %c0_i32_0 = arith.constant 0 : i32
    %c0_i32_1 = arith.constant 0 : i32
    return %c0_i32, %c0_i32_0 : i32, i32
  }
  func.func @transform_13(%arg0: i32) -> (i32, i32, i32) {
    %c0_i32 = arith.constant 0 : i32
    %c0_i32_0 = arith.constant 0 : i32
    %c0_i32_1 = arith.constant 0 : i32
    return %arg0, %c0_i32, %c0_i32_0 : i32, i32, i32
  }
}

</mosaic_0001>

<bundles_post_ra>
// kernel: tpu_custom_call.1
= control target key start
LH: loop header
LB: loop body
LE: loop exit
PB: predicated region body
PF: predicated region fallthrough
CT: control target
= control target key end

     0   :  { %s2720_s0 = inlined_call_operand.hbm [shape: f32[2,8,32], index: 0, kind: input, shape index: {}]   ;;  %s2721_s1 = inlined_call_operand.vmem [shape: f32[32,96], index: 1, kind: input, shape index: {}]   ;;  %s2722_s2 = inlined_call_operand.vmem [shape: f32[1,96], index: 2, kind: input, shape index: {}]   ;;  %s2723_s3 = inlined_call_operand.vmem [shape: f32[32,32], index: 3, kind: input, shape index: {}]   ;;  %s2724_s4 = inlined_call_operand.vmem [shape: f32[1,32], index: 4, kind: input, shape index: {}]   ;;  %s2725_s5 = inlined_call_operand.hbm [shape: f32[1,32], index: 5, kind: input, shape index: {}]   ;;  %s2726_s6 = inlined_call_operand.hbm [shape: f32[1,32], index: 6, kind: input, shape index: {}]   ;;  %s2727_s7 = inlined_call_operand.vmem [shape: f32[32,64], index: 7, kind: input, shape index: {}]   ;;  %s2728_s8 = inlined_call_operand.hbm [shape: f32[1,64], index: 8, kind: input, shape index: {}]   ;;  %s2729_s9 = inlined_call_operand.vmem [shape: f32[64,32], index: 9, kind: input, shape index: {}]   ;;  %s2730_s10 = inlined_call_operand.vmem [shape: f32[1,32], index: 10, kind: input, shape index: {}]   ;;  %s2731_s11 = inlined_call_operand.vmem [shape: f32[1,32], index: 11, kind: input, shape index: {}]   ;;  %s2732_s12 = inlined_call_operand.vmem [shape: f32[1,32], index: 12, kind: input, shape index: {}]   ;;  %s2733_s13 = inlined_call_operand.hbm [shape: f32[2,8,32], index: 13, kind: output, shape index: {}]  }
   0x1   :  { %2740 = sst [smem:[#allocation18_spill]] %s2720_s0 }
   0x2   :  { %2741 = sst [smem:[#allocation19_spill]] %s2721_s1 }
   0x3   :  { %2742 = sst [smem:[#allocation20_spill]] %s2731_s11 }
   0x4   :  { %2743 = sst [smem:[#allocation21_spill]] %s2732_s12 }
   0x5   :  { %2744 = sst [smem:[#allocation22_spill]] %s2733_s13 }
   0x6   :  { %18 = vsyncpa [#allocation4], 0 }
   0x7   :  { %20 = vsyncpa [#allocation4 + $0x1], 0 }
   0x8   :  { %21 = vsyncpa [#allocation7], 0 }
   0x9   :  { %22 = vsyncpa [#allocation10], 0 }
   0xa   :  { %23 = vsyncpa [#allocation5], 0 }
   0xb   :  { %25 = vsyncpa [#allocation5 + $0x1], 0  ;;  %s2299_s25 = smov 0   ;;  %s2301_s26 = smov 0  }
   0xc   :  { %s2303_s27 = smov 0   ;;  %s2305_s28 = smov 0  }
   0xd LB: > { %2745 = sst [smem:[#allocation16_spill]] %s2193_s25  ;;  %s2320_s29 = sadd.s32 4294967295, %s2205_s28   ;;  %s2205_s28 = sphi %s2305_s28, %s2773_s28   ;;  %s2201_s27 = sphi %s2303_s27, %s2772_s27   ;;  %s2197_s26 = sphi %s2301_s26, %s2771_s26   ;;  %s2193_s25 = sphi %s2299_s25, %s2770_s25  }
   0xe   : > { %s1699_s30 = sadd.s32 4294967294, %s2205_s28   ;;  %p51_p0 = scmp.ne.s32.totalorder %s2197_s26, %s2193_s25 }
   0xf   : > { %p2737_p1 = scmp.eq.s32.totalorder %s2320_s29, 0  ;;  %p333_p3 = scmp.eq.s32.totalorder %s1699_s30, 1 }
  0x10   : > { %p1700_p5 = scmp.ge.s32.totalorder %s2205_s28, 1  ;;  %p340_p7 = scmp.lt.s32.totalorder %s2205_s28, 3 }
  0x11   : > { %p2329_p4 = por %p2737_p1, %p51_p0  ;;  %p2334_p6 = por %p333_p3, %p51_p0 }
  0x12   : > { %p2339_p8 = pnand %p1700_p5, %p340_p7  ;;  %s2207_s17 = smov [#allocation6]  }
  0x13   : > { %s2746_s14 = scalar_select %p2329_p4, 1, 0 }
  0x14   : > { %s2747_s15 = scalar_select %p2334_p6, 1, 0 }
  0x15   : > { %s2749_s16 = scalar_select %p2339_p8, 1, 0 }
  0x16   : > { %2748 = sst [smem:[#allocation17_spill]] %s2747_s15  ;;  %s365_s18 = sshll.u32 %s2207_s17, 4  ;;  %s366_s18 = int_to_ptr.vmem [resolvable:$true] %s365_s18 }
  0x17   : > { %p1919_p10 = pneg %p2339_p8  ;;  %s2208_s19 = smov [#allocation8]  }
  0x18   : > { %s376_s20 = sshll.u32 %s2208_s19, 4  ;;  %s2209_s22 = smov [#allocation9]   ;;  %s2352_s20 = int_to_ptr.vmem [resolvable:$true] %s376_s20 }
  0x19   : > { %p2348_p11 = pnand %p1919_p10, %p2737_p1  ;;  %s390_s23 = sshll.u32 %s2209_s22, 4  ;;  %s2354_s23 = int_to_ptr.vmem [resolvable:$true] %s390_s23 }
  0x1a   : > { %s2017_s17 = scalar_lea.hbm %s2725_s5, 16 }
  0x1b   : > { %p2018_p12 = scmp.ne.s32.totalorder %s2725_s5, %s2017_s17  ;;  %p2364_p13 = pneg %p2348_p11 }
  0x1c   : > { %p2024_p5 = scmp.lt.u32.totalorder %s2017_s17, %s2725_s5 }
  0x1d   : > { %p2020_p0 = pnand %p2364_p13, %p2018_p12 }
  0x1f   : > { %p2021_p3 = pneg %p2020_p0 }
  0x21   : > { %p2026_p7 = pnand %p2024_p5, %p2021_p3 }
  0x23   : > { %2029 = shalt.err (!%p2026_p7)
}
  0x24   : > { %s2030_s24 = scalar_lea.vmem %s366_s18, 16  ;;  %s2037_s25 = scalar_lea.vmem %s366_s18, 32 }
  0x25   : > { %p2031_p10 = scmp.ne.s32.totalorder %s366_s18, %s2030_s24  ;;  %p2038_p2 = scmp.lt.s32.totalorder %s366_s18, %s366_s18 }
  0x26   : > { %p2039_p6 = scmp.lt.s32.totalorder %s2037_s25, %s2030_s24 }
  0x27   : > { %p2033_p9 = pnand %p2031_p10, %p2364_p13 }
  0x28   : > { %p2040_p4 = por %p2039_p6, %p2038_p2 }
  0x29   : > { %p2034_p1 = pneg %p2033_p9 }
  0x2b   : > { %p2041_p8 = pnand %p2040_p4, %p2034_p1 }
  0x2d   : > { %2044 = shalt.err (!%p2041_p8)
}
  0x2e   : > { %1922 = dma.hbm_to_vmem [thread:$0]  (!%p2348_p11), %s2725_s5, 16, %s366_s18, [#allocation7]  }
  0x2f   : > { %s2045_s22 = scalar_lea.hbm %s2726_s6, 16 }
  0x30   : > { %p2046_p9 = scmp.ne.s32.totalorder %s2726_s6, %s2045_s22  ;;  %p2052_p1 = scmp.lt.u32.totalorder %s2045_s22, %s2726_s6 }
  0x32   : > { %p2048_p12 = pnand %p2046_p9, %p2364_p13 }
  0x34   : > { %p2049_p2 = pneg %p2048_p12 }
  0x36   : > { %p2054_p4 = pnand %p2052_p1, %p2049_p2 }
  0x38   : > { %2057 = shalt.err (!%p2054_p4)
}
  0x39   : > { %s2058_s18 = scalar_lea.vmem %s2352_s20, 16  ;;  %s2065_s11 = scalar_lea.vmem %s2352_s20, 32 }
  0x3a   : > { %p2059_p6 = scmp.ne.s32.totalorder %s2352_s20, %s2058_s18  ;;  %p2066_p3 = scmp.lt.s32.totalorder %s2352_s20, %s2352_s20 }
  0x3b   : > { %p2067_p5 = scmp.lt.s32.totalorder %s2065_s11, %s2058_s18 }
  0x3c   : > { %p2061_p8 = pnand %p2059_p6, %p2364_p13 }
  0x3d   : > { %p2068_p7 = por %p2067_p5, %p2066_p3 }
  0x3e   : > { %p2062_p0 = pneg %p2061_p8 }
  0x40   : > { %p2069_p10 = pnand %p2068_p7, %p2062_p0 }
  0x42   : > { %2072 = shalt.err (!%p2069_p10)
}
  0x43   : > { %1925 = dma.hbm_to_vmem [thread:$0]  (!%p2348_p11), %s2726_s6, 16, %s2352_s20, [#allocation7]  }
  0x44   : > { %s2073_s17 = scalar_lea.hbm %s2728_s8, 16 }
  0x45   : > { %p2074_p9 = scmp.ne.s32.totalorder %s2728_s8, %s2073_s17  ;;  %p2080_p1 = scmp.lt.u32.totalorder %s2073_s17, %s2728_s8 }
  0x47   : > { %p2076_p12 = pnand %p2074_p9, %p2364_p13 }
  0x49   : > { %p2077_p2 = pneg %p2076_p12 }
  0x4b   : > { %p2082_p4 = pnand %p2080_p1, %p2077_p2 }
  0x4d   : > { %2085 = shalt.err (!%p2082_p4)
}
  0x4e   : > { %s2086_s20 = scalar_lea.vmem %s2354_s23, 16  ;;  %s2093_s11 = scalar_lea.vmem %s2354_s23, 32 }
  0x4f   : > { %p2087_p6 = scmp.ne.s32.totalorder %s2354_s23, %s2086_s20  ;;  %p2094_p3 = scmp.lt.s32.totalorder %s2354_s23, %s2354_s23 }
  0x50   : > { %p2095_p5 = scmp.lt.s32.totalorder %s2093_s11, %s2086_s20 }
  0x51   : > { %p2089_p8 = pnand %p2087_p6, %p2364_p13 }
  0x52   : > { %p2096_p7 = por %p2095_p5, %p2094_p3 }
  0x53   : > { %p2090_p0 = pneg %p2089_p8 }
  0x55   : > { %p2097_p10 = pnand %p2096_p7, %p2090_p0 }
  0x57   : > { %2100 = shalt.err (!%p2097_p10)
}
  0x58   : > { %1928 = dma.hbm_to_vmem [thread:$0]  (!%p2348_p11), %s2728_s8, 16, %s2354_s23, [#allocation10]  }
  0x59   : > { %s2429_s19 = sadd.s32 1, %s2205_s28   ;;  %s38_s30 = sadd.s32 1, %s2201_s27 }
  0x5a   : > { %s35_s21 = ssub.s32 %s2205_s28, %s2429_s19  ;;  %p45_p9 = scmp.ne.s32.totalorder %s2201_s27, %s2197_s26 }
  0x5b   : > { %p36_p13 = scmp.eq.s32.totalorder %s35_s21, 0  ;;  %p46_p12 = scmp.eq.s32.totalorder %s2205_s28, 0 }
  0x5c   : > { %p1940_p2 = scmp.lt.s32.totalorder %s2205_s28, 2  ;;  %p2752_p4 = scmp.eq.s32.totalorder %s2320_s29, 1 }
  0x5d   : > { %s2439_s13 = scalar_select %p36_p13, %s2201_s27, %s38_s30  }
  0x5e   : > { %p47_p1 = por %p46_p12, %p45_p9  ;;  %p2443_p6 = por %p2752_p4, %p45_p9 }
  0x5f   : > { %s413_s22 = sand.u32 1, %s2201_s27   ;;  %s1706_s24 = sshll.u32 %s2205_s28, 7 }
  0x60   : > { %s1705_s23 = sshll.u32 %s413_s22, 3  ;;  %s2754_s0 = sld [smem:[#allocation18_spill]] }
  0x61   : > { %s417_s11 = scalar_lea.vmem [#allocation3], %s1705_s23  ;;  %p2454_p11 = pnand %p1940_p2, %p47_p1 }
  0x62   : > { %s424_s12 = sshll.u32 %s417_s11, 4  ;;  %s414_s21 = scalar_lea.sflag [#allocation4], %s413_s22  ;;  %s2458_s12 = int_to_ptr.vmem [resolvable:$true] %s424_s12 }
  0x63   : > { %p2103_p0 = pneg %p2454_p11 }
  0x66   : > { %s2452_s20 = scalar_lea.hbm %s2754_s0, %s1706_s24  ;;  %s2106_s25 = scalar_lea.hbm %s2754_s0, 256 }
  0x67   : > { %s2101_s30 = scalar_lea.hbm %s2452_s20, 128  ;;  %p2107_p7 = scmp.lt.u32.totalorder %s2452_s20, %s2754_s0 }
  0x68   : > { %p2102_p8 = scmp.ne.s32.totalorder %s2452_s20, %s2101_s30  ;;  %p2108_p10 = scmp.lt.u32.totalorder %s2106_s25, %s2101_s30 }
  0x69   : > { %p2110_p9 = scmp.lt.u32.totalorder %s2101_s30, %s2452_s20 }
  0x6a   : > { %p2104_p3 = pnand %p2103_p0, %p2102_p8  ;;  %p2109_p13 = por %p2108_p10, %p2107_p7 }
  0x6c   : > { %p2105_p5 = pneg %p2104_p3  ;;  %p2111_p12 = por %p2110_p9, %p2109_p13 }
  0x6e   : > { %p2112_p2 = pnand %p2111_p12, %p2105_p5 }
  0x70   : > { %2115 = shalt.err (!%p2112_p2)
}
  0x71   : > { %s2116_s22 = scalar_lea.vmem %s2458_s12, 128  ;;  %s2210_s24 = smov [#allocation3]  }
  0x72   : > { %p2117_p1 = scmp.ne.s32.totalorder %s2458_s12, %s2116_s22  ;;  %s2121_s23 = sshll.u32 %s2210_s24, 4  ;;  %s2122_s23 = int_to_ptr.vmem [resolvable:$false] %s2121_s23 }
  0x73   : > { %s2123_s18 = scalar_lea.vmem %s2122_s23, 256  ;;  %p2124_p3 = scmp.lt.s32.totalorder %s2458_s12, %s2122_s23 }
  0x74   : > { %p2119_p4 = pnand %p2117_p1, %p2103_p0  ;;  %p2125_p7 = scmp.lt.s32.totalorder %s2123_s18, %s2116_s22 }
  0x76   : > { %p2120_p8 = pneg %p2119_p4  ;;  %p2126_p10 = por %p2125_p7, %p2124_p3 }
  0x78   : > { %p2127_p13 = pnand %p2126_p10, %p2120_p8 }
  0x7a   : > { %2130 = shalt.err (!%p2127_p13)
}
  0x7b   : > { %1932 = dma.hbm_to_vmem [thread:$0]  (!%p2454_p11), %s2452_s20, 128, %s2458_s12, %s414_s21  }
  0x7c   : > { %p2756_p5 = scmp.ne.s32.totalorder %s2749_s16, 0 }
  0x7d   : > { %s2488_s30 = sand.u32 (!%p2756_p5), 1, %s2197_s26   ;;  %p2757_p0 = scmp.ne.s32.totalorder (!%p2756_p5), %s2746_s14, 0 }
  0x7e   : > { %433 = sbr.rel (%p2756_p5) target bundleno = 2411 (0x96b), region = 72  ;;  %s1708_s25 = sshll.u32 (!%p2756_p5), %s2488_s30, 3 }
  0x7f   : > { %s436_s11 = scalar_lea.sflag (!%p2756_p5), [#allocation4], %s2488_s30  ;;  %s439_s22 = scalar_lea.vmem (!%p2756_p5), [#allocation3], %s1708_s25 }
  0x85   : > { %2176 = dma.done.wait (%p2757_p0), %s436_s11, 128  }
  0x86   : > { %2178 = vsyncadd (%p2757_p0), %s436_s11, 4294967168  ;;  %p2758_p11 = scmp.eq.s32.totalorder %s2320_s29, 0 }
  0x88   : > { %2180 = dma.done.wait (%p2758_p11), [#allocation7], 32   ;;  %p2759_p9 = pmov %p2758_p11 }
  0x8a   : > { %2182 = vsyncadd (%p2759_p9), [#allocation7], 4294967264  ;;  %p2760_p12 = pmov %p2759_p9 }
  0x8b   : > { %p2761_p2 = pmov %p2759_p9 }
  0x8c   : > { %2184 = dma.done.wait (%p2760_p12), [#allocation10], 16  }
  0x8d   : > { %2186 = vsyncadd (%p2761_p2), [#allocation10], 4294967280  ;;  %v2211_v0 = vmov 0.0|0.0   ;;  %vm2212_vm0 = vmmov 0   ;;  %v2213_v1 = vmov 0.0   ;;  %s2762_s1 = sld [smem:[#allocation19_spill]] }
  0x8e   : > { %1873 = vmatprep.subr.bf16.mxu1 %v2211_v0  ;;  %1789 = vmatprep.mubr.msk.f32.mxu1 %vm2212_vm0, %v2213_v1  ;;  %v2525_v8 = vld [vmem:[%s439_s22] sm:$0xff]  ;;  %vm506_vm1 = vcmask 261120   ;;  %v1713_v9 = vld [vmem:[%s2722_s2] ss:$0 sm:$0xff]  ;;  %s2214_s14 = smov 120   ;;  %s2215_s22 = smov 96  }
  0x8f   : > { %1802 = vmatprep.subr.mxu0 %v2213_v1  ;;  %1804 = vmatprep.mubr.msk.f32.mxu0 %vm2212_vm0, %v2213_v1  ;;  %s2216_s16 = smov 80   ;;  %s2217_s20 = smov 88   ;;  %vm583_vm2 = vcmask 64512   ;;  %vm915_vm3 = vcmask 130112   ;;  %vm1086_vm4 = vcmask 195712   ;;  %vm1257_vm5 = vcmask 261312  }
  0x90   : > { %s2218_s12 = smov 72   ;;  %s2219_s15 = smov 112   ;;  %vm1478_vm6 = vcmask 523264  }
  0x91   : > { %s2220_s21 = smov 104   ;;  %s2221_s24 = smov 56  }
  0x92   : > { %s2222_s23 = smov 64   ;;  %s2223_s18 = smov 48  }
  0x93   : > { %v495_v2 = vld [vmem:[%s2762_s1] sm:$0xff]  ;;  %v496_v3 = vld [vmem:[%s2762_s1 + $0x8] sm:$0xff]  ;;  %v497_v4 = vld [vmem:[%s2762_s1 + $0x10] sm:$0xff]  ;;  %s2224_s11 = smov 40   ;;  %s2765_s0 = sld [smem:[#allocation22_spill]] }
  0x94   : > { %v1874_v5 = vpack.c.bf16 %v496_v3, %v495_v2  ;;  %v498_v6 = vld [vmem:[%s2762_s1 + $0x18] sm:$0xff] }
  0x95   : > { %v1877_v7 = vpack.c.bf16 %v498_v6, %v497_v4 }
  0x96   : > { %1875 = vmatpush3.bf16.msra.mxu1 %v1874_v5 }
  0x97   : > { %1876 = vmatprep.subr.bf16.mxu1 %v2211_v0 }
  0x9a   : > { %1878 = vmatpush3.bf16.msra.mxu1 %v1877_v7 }
  0x9b   : > { %1792 = vmatprep.subr.mxu1 %v2213_v1 }
  0x9d   : > { %1790 = vmatmul.mubr.msk.f32.vlgmr.msra.gmra.mrb[0].mxu1 %vm506_vm1, %v2525_v8 }
  0x9e   : > { %1794 = vmatprep.mubr.msk.f32.mxu1 %vm2212_vm0, %v2213_v1 }
 0x170   : > { %v576_v10 = vpop.f32.mrb[0].mxu1 }
 0x171   : > { %v2535_v11 = vadd.f32 %v1713_v9, %v576_v10  ;;  %v1791_v12 = vpop.f32.mrb[1].mxu1 }
 0x172   : > { %v1261_v12 = vld [vmem:[%s2723_s3 + $0x8] sm:$0xff] }
 0x173   : > { %746 = vrot.lane.b32.xlu1 %v2535_v11, %s2214_s14  ;;  %581 = vrot.lane.b32.xlu0 %v2535_v11, %s2215_s22  ;;  %s2225_s14 = smov 8   ;;  %s1738_s22 = sshll.u32 %s2320_s29, 7 }
 0x174   : > { %s2675_s1 = scalar_lea.hbm %s2765_s0, %s1738_s22  ;;  %s2228_s29 = smov [#allocation11]  }
 0x177   : > { %919 = vrot.lane.b32.xlu1 %v2535_v11, %s2216_s16  ;;  %748 = vrot.lane.b32.xlu0 %v2535_v11, %s2217_s20  ;;  %s493_s16 = scalar_lea.vmem [#allocation11], %s1708_s25  ;;  %s2135_s25 = sshll.u32 %s2228_s29, 4  ;;  %s2136_s25 = int_to_ptr.vmem [resolvable:$false] %s2135_s25 }
 0x178   : > { %s1600_s20 = sshll.u32 %s493_s16, 4  ;;  %s2677_s20 = int_to_ptr.vmem [resolvable:$true] %s1600_s20 }
 0x179   : > { %p2138_p3 = scmp.lt.s32.totalorder %s2677_s20, %s2136_s25 }
 0x17b   : > { %1090 = vrot.lane.b32.xlu1 %v2535_v11, %s2218_s12  ;;  %917 = vrot.lane.b32.xlu0 %v2535_v11, %s2219_s15 }
 0x17f   : > { %1088 = vrot.lane.b32.xlu0 %v2535_v11, %s2220_s21  ;;  %s1587_s21 = scalar_lea.sflag [#allocation5], %s2488_s30 }
 0x1e5   : > { %v747_v13 = vpop.permute.xlu1 %746  ;;  %v582_v14 = vpop.permute.xlu0 %581 }
 0x1e6   : > { %1793 = vmatpush3.xpose.msk.msra.mxu1 %vm583_vm2, %v582_v14  ;;  %v1262_v14 = vld [vmem:[%s2723_s3 + $0x10] sm:$0xff] }
 0x1e7   : > { %1797 = vmatprep.subr.mxu1 %v2213_v1 }
 0x1e9   : > { %1795 = vmatmul.mubr.msk.f32.vlgmr.msra.gmra.mrb[2].mxu1 %vm583_vm2, %v2535_v11  ;;  %v749_v15 = vpop.permute.xlu0 %748  ;;  %v920_v16 = vpop.permute.xlu1 %919 }
 0x1ea   : > { %1803 = vmatpush3.xpose.msk.msra.mxu0 %vm583_vm2, %v749_v15  ;;  %1799 = vmatprep.mubr.msk.f32.mxu1 %vm2212_vm0, %v2213_v1  ;;  %v1263_v15 = vld [vmem:[%s2723_s3 + $0x18] sm:$0xff] }
 0x1eb   : > { %1812 = vmatprep.subr.mxu0 %v2213_v1 }
 0x1ed   : > { %1805 = vmatmul.mubr.msk.f32.vlgmr.msra.gmra.mrb[0].mxu0 %vm583_vm2, %v747_v13  ;;  %v918_v17 = vpop.permute.xlu0 %917  ;;  %v1091_v18 = vpop.permute.xlu1 %1090 }
 0x1ee   : > { %1813 = vmatpush3.xpose.msk.msra.mxu0 %vm583_vm2, %v920_v16  ;;  %1814 = vmatprep.mubr.msk.f32.mxu0 %vm2212_vm0, %v2213_v1  ;;  %v1883_v16 = vpack.c.bf16 %v1263_v15, %v1262_v14 }
 0x1ef   : > { %1822 = vmatprep.subr.mxu0 %v2213_v1 }
 0x1f1   : > { %1815 = vmatmul.mubr.msk.f32.vlgmr.msra.gmra.mrb[2].mxu0 %vm583_vm2, %v918_v17  ;;  %v1089_v19 = vpop.permute.xlu0 %1088 }
 0x1f2   : > { %1823 = vmatpush3.xpose.msk.msra.mxu0 %vm583_vm2, %v1091_v18  ;;  %1824 = vmatprep.mubr.msk.f32.mxu0 %vm2212_vm0, %v2213_v1 }
 0x1f3   : > { %1879 = vmatprep.subr.bf16.mxu0 %v2211_v0 }
 0x1f5   : > { %1825 = vmatmul.mubr.msk.f32.vlgmr.msra.gmra.mrb[4].mxu0 %vm583_vm2, %v1089_v19 }
 0x1f6   : > { %1840 = vmatprep.mubr.msk.f32.mxu0 %vm2212_vm0, %v2213_v1 }
 0x2bc   : > { %v654_v20 = vpop.f32.mrb[2].mxu1 }
 0x2bd   : > { %v1796_v21 = vpop.f32.mrb[3].mxu1  ;;  %v658_v22 = vsel %vm583_vm2, %v654_v20, -inf }
 0x2be   : > { %659 = vmax.xlane.f32.xlu1 %v658_v22 }
 0x2c0   : > { %v820_v23 = vpop.f32.mrb[0].mxu0 }
 0x2c1   : > { %v1806_v24 = vpop.f32.mrb[1].mxu0  ;;  %v824_v25 = vsel %vm583_vm2, %v820_v23, -inf }
 0x2c2   : > { %825 = vmax.xlane.f32.xlu0 %v824_v25  ;;  %v1727_v25 = vld [vmem:[%s2724_s4] ss:$0 sm:$0xff] }
 0x2c4   : > { %v991_v26 = vpop.f32.mrb[2].mxu0 }
 0x2c5   : > { %v1816_v27 = vpop.f32.mrb[3].mxu0  ;;  %v995_v28 = vsel %vm583_vm2, %v991_v26, -inf }
 0x2c6   : > { %996 = vmax.xlane.f32.xlu0 %v995_v28 }
 0x2c8   : > { %v1162_v29 = vpop.f32.mrb[4].mxu0 }
 0x2c9   : > { %v1826_v30 = vpop.f32.mrb[5].mxu0  ;;  %v1166_v31 = vsel %vm583_vm2, %v1162_v29, -inf }
 0x2ca   : > { %1167 = vmax.xlane.f32.xlu1 %v1166_v31 }
 0x2db   : > { %835 = vrot.lane.b32.xlu1 %v2535_v11, %s2221_s24  ;;  %s2131_s24 = scalar_lea.vmem %s2677_s20, 128 }
 0x2dc   : > { %p2132_p1 = scmp.ne.s32.totalorder %s2677_s20, %s2131_s24 }
 0x2de   : > { %p2133_p4 = pnand %p2132_p1, %p2443_p6 }
 0x2e0   : > { %p2134_p8 = pneg %p2133_p4 }
 0x34b   : > { %v660_v32 = vpop.xlane.xlu1 %659 }
 0x34c   : > { %v661_v33 = vsub.f32 %v654_v20, %v660_v32 }
 0x34e   : > { %v662_v34 = vmul.f32 1.442695, %v661_v33  ;;  %v1379_v33 = vld [vmem:[%s2727_s7 + $0x8] sm:$0xff] }
 0x34f   : > { %v826_v35 = vpop.xlane.xlu0 %825 }
 0x350   : > { %1997 = vpow2.f32 %v662_v34  ;;  %v827_v36 = vsub.f32 %v820_v23, %v826_v35  ;;  %v1381_v35 = vld [vmem:[%s2727_s7 + $0x18] sm:$0xff] }
 0x352   : > { %v828_v37 = vmul.f32 1.442695, %v827_v36 }
 0x353   : > { %v997_v47 = vpop.xlane.xlu0 %996 }
 0x354   : > { %1999 = vpow2.f32 %v828_v37  ;;  %v998_v48 = vsub.f32 %v991_v26, %v997_v47  ;;  %v1463_v37 = vld [vmem:[%s2729_s9] sm:$0xff] }
 0x356   : > { %v999_v49 = vmul.f32 1.442695, %v998_v48 }
 0x357   : > { %v1168_v38 = vpop.xlane.xlu1 %1167 }
 0x358   : > { %v1169_v39 = vsub.f32 %v1162_v29, %v1168_v38  ;;  %v1464_v38 = vld [vmem:[%s2729_s9 + $0x8] sm:$0xff] }
 0x35a   : > { %v1998_v40 = vpop.eup %1997  ;;  %v1170_v41 = vmul.f32 1.442695, %v1169_v39  ;;  %v1465_v39 = vld [vmem:[%s2729_s9 + $0x10] sm:$0xff] }
 0x35b   : > { %v664_v42 = vsel %vm583_vm2, %v1998_v40, 0.0  ;;  %v836_v52 = vpop.permute.xlu1 %835 }
 0x35c   : > { %2001 = vpow2.f32 %v1170_v41  ;;  %665 = vadd.xlane.f32.xlu0 %v664_v42  ;;  %v1466_v41 = vld [vmem:[%s2729_s9 + $0x18] sm:$0xff] }
 0x35d   : > { %2003 = vpow2.f32 %v999_v49  ;;  %v1895_v42 = vpack.c.bf16 %v1466_v41, %v1465_v39 }
 0x35e   : > { %v2000_v43 = vpop.eup %1999 }
 0x35f   : > { %v830_v44 = vsel %vm583_vm2, %v2000_v43, 0.0 }
 0x360   : > { %831 = vadd.xlane.f32.xlu1 %v830_v44  ;;  %v1468_v44 = vld [vmem:[%s2729_s9 + $0x28] sm:$0xff] }
 0x366   : > { %v2002_v45 = vpop.eup %2001 }
 0x367   : > { %v1172_v46 = vsel %vm583_vm2, %v2002_v45, 0.0  ;;  %v2004_v50 = vpop.eup %2003 }
 0x368   : > { %1173 = vadd.xlane.f32.xlu1 %v1172_v46  ;;  %v1001_v51 = vsel %vm583_vm2, %v2004_v50, 0.0 }
 0x372   : > { %669 = vrot.lane.b32.xlu0 %v2535_v11, %s2222_s23  ;;  %s2763_s23 = sld [smem:[#allocation20_spill]] }
 0x379   : > { %1006 = vrot.lane.b32.xlu1 %v2535_v11, %s2223_s18  ;;  %s2226_s18 = smov 16  }
 0x391   : > { %1002 = vadd.xlane.f32.xlu0 %v1001_v51 }
 0x3a7   : > { %1177 = vrot.lane.b32.xlu0 %v2535_v11, %s2224_s11  ;;  %v1260_v11 = vld [vmem:[%s2723_s3] sm:$0xff]  ;;  %s2227_s11 = smov 24  }
 0x3a8   : > { %v1880_v13 = vpack.c.bf16 %v1261_v12, %v1260_v11 }
 0x3aa   : > { %1881 = vmatpush3.bf16.msra.mxu0 %v1880_v13 }
 0x3ab   : > { %1882 = vmatprep.subr.bf16.mxu0 %v2211_v0 }
 0x3ae   : > { %1884 = vmatpush3.bf16.msra.mxu0 %v1883_v16 }
 0x3af   : > { %1891 = vmatprep.subr.bf16.mxu0 %v2211_v0 }
 0x3e9   : > { %v666_v53 = vpop.xlane.xlu0 %665 }
 0x3ea   : > { %2005 = vrcp.f32 %v666_v53 }
 0x3ed   : > { %v670_v54 = vpop.permute.xlu0 %669  ;;  %v832_v55 = vpop.xlane.xlu1 %831 }
 0x3ee   : > { %2007 = vrcp.f32 %v832_v55  ;;  %1798 = vmatpush3.msra.mxu1 %v670_v54 }
 0x3ef   : > { %1807 = vmatprep.subr.mxu1 %v2213_v1 }
 0x3f4   : > { %v2006_v56 = vpop.eup %2005 }
 0x3f5   : > { %v668_v57 = vmul.f32 %v2006_v56, %v1998_v40  ;;  %v1174_v58 = vpop.xlane.xlu1 %1173  ;;  %v1892_v40 = vpack.c.bf16 %v1464_v38, %v1463_v37  ;;  %v1729_v56 = vld [vmem:[#allocation6] ss:$0 sm:$0xff] }
 0x3f7   : > { %1800 = vmatmul.mubr.msk.f32.vlgmr.msra.gmra.mrb[4].mxu1 %vm583_vm2, %v668_v57 }
 0x3f8   : > { %v2008_v59 = vpop.eup %2007  ;;  %1808 = vmatpush3.msra.mxu1 %v836_v52  ;;  %1809 = vmatprep.mubr.msk.f32.mxu1 %vm2212_vm0, %v2213_v1 }
 0x3f9   : > { %v834_v60 = vmul.f32 %v2008_v59, %v2000_v43  ;;  %v1007_v61 = vpop.permute.xlu1 %1006  ;;  %1817 = vmatprep.subr.mxu1 %v2213_v1  ;;  %v1467_v43 = vld [vmem:[%s2729_s9 + $0x20] sm:$0xff] }
 0x3fb   : > { %1810 = vmatmul.mubr.msk.f32.vlgmr.msra.gmra.mrb[6].mxu1 %vm583_vm2, %v834_v60 }
 0x3fc   : > { %1818 = vmatpush3.msra.mxu1 %v1007_v61  ;;  %1819 = vmatprep.mubr.msk.f32.mxu1 %vm2212_vm0, %v2213_v1  ;;  %v1470_v61 = vld [vmem:[%s2729_s9 + $0x38] sm:$0xff] }
 0x3fd   : > { %1827 = vmatprep.subr.mxu1 %v2213_v1 }
 0x41e   : > { %v1003_v62 = vpop.xlane.xlu0 %1002 }
 0x41f   : > { %2009 = vrcp.f32 %v1003_v62 }
 0x420   : > { %2011 = vrcp.f32 %v1174_v58  ;;  %v1730_v58 = vld [vmem:[#allocation8] ss:$0 sm:$0xff] }
 0x422   : > { %v1178_v4 = vpop.permute.xlu0 %1177 }
 0x429   : > { %v2010_v63 = vpop.eup %2009 }
 0x42a   : > { %v1005_v2 = vmul.f32 %v2010_v63, %v2004_v50  ;;  %v2012_v3 = vpop.eup %2011  ;;  %v1731_v63 = vld [vmem:[#allocation9] ss:$0 sm:$0xff] }
 0x42b   : > { %v1176_v5 = vmul.f32 %v2012_v3, %v2002_v45  ;;  %v1898_v45 = vpack.c.bf16 %v1468_v44, %v1467_v43 }
 0x42c   : > { %1820 = vmatmul.mubr.msk.f32.vlgmr.msra.gmra.mrb[8].mxu1 %vm583_vm2, %v1005_v2 }
 0x42d   : > { %1828 = vmatpush3.msra.mxu1 %v1178_v4  ;;  %1829 = vmatprep.mubr.msk.f32.mxu1 %vm2212_vm0, %v2213_v1 }
 0x42e   : > { %1885 = vmatprep.subr.bf16.mxu1 %v2211_v0 }
 0x430   : > { %1830 = vmatmul.mubr.msk.f32.vlgmr.msra.gmra.mrb[10].mxu1 %vm583_vm2, %v1176_v5 }
 0x431   : > { %1851 = vmatprep.mubr.msk.f32.mxu1 %vm2212_vm0, %v2213_v1 }
 0x4ca   : > { %v741_v6 = vpop.f32.mrb[4].mxu1 }
 0x4cb   : > { %745 = vst.msk [vmem:[#allocation2] sm:$0xff] %vm583_vm2, %v741_v6  ;;  %v1801_v7 = vpop.f32.mrb[5].mxu1  ;;  %v1733_v6 = vld [vmem:[%s2730_s10] ss:$0 sm:$0xff] }
 0x4ce   : > { %v907_v9 = vpop.f32.mrb[6].mxu1 }
 0x4cf   : > { %912 = vrot.lane.b32.xlu1 %v907_v9, %s2225_s14  ;;  %v1811_v10 = vpop.f32.mrb[7].mxu1  ;;  %s2764_s14 = sld [smem:[#allocation21_spill]] }
 0x4ff   : > { %v1078_v17 = vpop.f32.mrb[8].mxu1 }
 0x500   : > { %1083 = vrot.lane.b32.xlu0 %v1078_v17, %s2226_s18  ;;  %v1821_v18 = vpop.f32.mrb[9].mxu1 }
 0x503   : > { %v1249_v19 = vpop.f32.mrb[10].mxu1 }
 0x504   : > { %1254 = vrot.lane.b32.xlu1 %v1249_v19, %s2227_s11  ;;  %v1831_v20 = vpop.f32.mrb[11].mxu1 }
 0x541   : > { %v913_v21 = vpop.permute.xlu1 %912 }
 0x542   : > { %916 = vst.msk [vmem:[#allocation2] sm:$0xff] %vm915_vm3, %v913_v21 }
 0x572   : > { %v1084_v22 = vpop.permute.xlu0 %1083 }
 0x573   : > { %1087 = vst.msk [vmem:[#allocation2] sm:$0xff] %vm1086_vm4, %v1084_v22 }
 0x576   : > { %v1255_v23 = vpop.permute.xlu1 %1254 }
 0x577   : > { %1258 = vst.msk [vmem:[#allocation2] sm:$0xff] %vm1257_vm5, %v1255_v23 }
 0x57e   : > { %v1259_v24 = vld [vmem:[#allocation2] sm:$0xff] }
 0x57f   : > { %1841 = vmatmul.mubr.msk.f32.vlgmr.msra.gmra.mrb[6].mxu0 %vm506_vm1, %v1259_v24 }
 0x580   : > { %1870 = vmatprep.mubr.msk.f32.mxu0 %vm2212_vm0, %v2213_v1  ;;  %v1378_v1 = vld [vmem:[%s2727_s7] sm:$0xff]  ;;  %1893 = vmatpush3.bf16.msra.mxu0 %v1892_v40 }
 0x581   : > { %v1886_v34 = vpack.c.bf16 %v1379_v33, %v1378_v1  ;;  %1894 = vmatprep.subr.bf16.mxu0 %v2211_v0 }
 0x583   : > { %1887 = vmatpush3.bf16.msra.mxu1 %v1886_v34 }
 0x584   : > { %1888 = vmatprep.subr.bf16.mxu1 %v2211_v0  ;;  %1896 = vmatpush3.bf16.msra.mxu0 %v1895_v42 }
 0x585   : > { %1897 = vmatprep.subr.bf16.mxu0 %v2211_v0 }
 0x588   : > { %1899 = vmatpush3.bf16.msra.mxu0 %v1898_v45 }
 0x589   : > { %1900 = vmatprep.subr.bf16.mxu0 %v2211_v0  ;;  %v1469_v0 = vld [vmem:[%s2729_s9 + $0x30] sm:$0xff] }
 0x58a   : > { %v1901_v62 = vpack.c.bf16 %v1470_v61, %v1469_v0 }
 0x58c   : > { %1902 = vmatpush3.bf16.msra.mxu0 %v1901_v62 }
 0x652   : > { %v1340_v26 = vpop.f32.mrb[6].mxu0 }
 0x653   : > { %v1341_v27 = vadd.f32 %v1727_v25, %v1340_v26  ;;  %v1842_v28 = vpop.f32.mrb[7].mxu0  ;;  %v1735_v25 = vld [vmem:[%s2763_s23] ss:$0 sm:$0xff]  ;;  %s2137_s23 = scalar_lea.vmem %s2136_s25, 256 }
 0x654   : > { %p2139_p7 = scmp.lt.s32.totalorder %s2137_s23, %s2131_s24 }
 0x655   : > { %v1344_v29 = vadd.f32 %v1341_v27, %v2525_v8  ;;  %v1380_v8 = vld [vmem:[%s2727_s7 + $0x10] sm:$0xff]  ;;  %v1736_v27 = vld [vmem:[%s2764_s14] ss:$0 sm:$0xff] }
 0x656   : > { %v1889_v36 = vpack.c.bf16 %v1381_v35, %v1380_v8  ;;  %p2140_p10 = por %p2139_p7, %p2138_p3 }
 0x657   : > { %v1347_v30 = vsel %vm506_vm1, %v1344_v29, 0.0  ;;  %v1352_v31 = vmul.f32 %v1344_v29, %v1344_v29 }
 0x658   : > { %1348 = vadd.xlane.f32.xlu0 %v1347_v30  ;;  %1890 = vmatpush3.bf16.msra.mxu1 %v1889_v36  ;;  %p2141_p13 = pnand %p2140_p10, %p2134_p8 }
 0x659   : > { %v1353_v32 = vsel %vm506_vm1, %v1352_v31, 0.0 }
 0x65a   : > { %1354 = vadd.xlane.f32.xlu1 %v1353_v32 }
 0x6e5   : > { %v1349_v46 = vpop.xlane.xlu0 %1348 }
 0x6e6   : > { %v1351_v47 = vmul.f32 0.03125, %v1349_v46 }
 0x6e7   : > { %v1355_v48 = vpop.xlane.xlu1 %1354 }
 0x6e8   : > { %v1357_v49 = vmul.f32 %v1351_v47, %v1351_v47  ;;  %v1356_v50 = vmul.f32 0.03125, %v1355_v48  ;;  %v1360_v54 = vsub.f32 %v1344_v29, %v1351_v47 }
 0x6ea   : > { %v1358_v51 = vsub.f32 %v1356_v50, %v1357_v49 }
 0x6ec   : > { %v1359_v52 = vmax.f32 %v1358_v51, 0.0 }
 0x6ee   : > { %v1361_v53 = vadd.f32 1e-05, %v1359_v52 }
 0x6f0   : > { %2013 = vrsqrt.f32 %v1361_v53 }
 0x6fa   : > { %v2014_v55 = vpop.eup %2013 }
 0x6fb   : > { %v1363_v57 = vmul.f32 %v2014_v55, %v1360_v54 }
 0x6fd   : > { %v1370_v59 = vmul.f32 %v1729_v56, %v1363_v57 }
 0x6ff   : > { %v1377_v60 = vadd.f32 %v1730_v58, %v1370_v59 }
 0x701   : > { %1852 = vmatmul.mubr.msk.f32.vlgmr.msra.gmra.mrb[12].mxu1 %vm506_vm1, %v1377_v60 }
 0x7d4   : > { %v1458_v2 = vpop.f32.mrb[12].mxu1 }
 0x7d5   : > { %v1459_v3 = vadd.f32 %v1731_v63, %v1458_v2  ;;  %v1853_v4 = vpop.f32.mrb[13].mxu1 }
 0x7d7   : > { %v1462_v5 = vmax.f32 %v1459_v3, 0.0 }
 0x7d9   : > { %1871 = vmatmul.mubr.msk.f32.vlgmr.msra.gmra.mrb[8].mxu0 %vm1478_vm6, %v1462_v5 }
 0x8ac   : > { %v1548_v7 = vpop.f32.mrb[8].mxu0 }
 0x8ad   : > { %v1549_v9 = vadd.f32 %v1733_v6, %v1548_v7  ;;  %v1872_v10 = vpop.f32.mrb[9].mxu0 }
 0x8af   : > { %v1552_v11 = vadd.f32 %v1549_v9, %v1377_v60 }
 0x8b1   : > { %v1555_v12 = vsel %vm506_vm1, %v1552_v11, 0.0  ;;  %v1559_v13 = vmul.f32 %v1552_v11, %v1552_v11 }
 0x8b2   : > { %1556 = vadd.xlane.f32.xlu0 %v1555_v12 }
 0x8b3   : > { %v1560_v14 = vsel %vm506_vm1, %v1559_v13, 0.0 }
 0x8b6   : > { %1561 = vadd.xlane.f32.xlu0 %v1560_v14 }
 0x93f   : > { %v1557_v15 = vpop.xlane.xlu0 %1556 }
 0x940   : > { %v1558_v16 = vmul.f32 0.03125, %v1557_v15 }
 0x942   : > { %v1564_v18 = vmul.f32 %v1558_v16, %v1558_v16  ;;  %v1567_v23 = vsub.f32 %v1552_v11, %v1558_v16 }
 0x943   : > { %v1562_v17 = vpop.xlane.xlu0 %1561 }
 0x944   : > { %v1563_v19 = vmul.f32 0.03125, %v1562_v17 }
 0x946   : > { %v1565_v20 = vsub.f32 %v1563_v19, %v1564_v18 }
 0x948   : > { %v1566_v21 = vmax.f32 %v1565_v20, 0.0 }
 0x94a   : > { %v1568_v22 = vadd.f32 1e-05, %v1566_v21 }
 0x94c   : > { %2015 = vrsqrt.f32 %v1568_v22 }
 0x956   : > { %v2016_v24 = vpop.eup %2015 }
 0x957   : > { %v1570_v26 = vmul.f32 %v2016_v24, %v1567_v23 }
 0x959   : > { %v1577_v28 = vmul.f32 %v1735_v25, %v1570_v26 }
 0x95b   : > { %v1584_v29 = vadd.f32 %v1736_v27, %v1577_v28 }
 0x95d   : > { %1585 = vst.msk [vmem:[%s493_s16] sm:$0xff] %vm506_vm1, %v1584_v29 }
 0x95e   : > { %2144 = shalt.err (!%p2141_p13)
}
 0x95f   : > { %s2145_s30 = scalar_lea.hbm %s2675_s1, 128  ;;  %s2149_s14 = scalar_lea.hbm %s2765_s0, 256 }
 0x960   : > { %p2146_p5 = scmp.ne.s32.totalorder %s2675_s1, %s2145_s30  ;;  %p2150_p9 = scmp.lt.u32.totalorder %s2675_s1, %s2765_s0 }
 0x961   : > { %p2151_p12 = scmp.lt.u32.totalorder %s2149_s14, %s2145_s30  ;;  %p2153_p1 = scmp.lt.u32.totalorder %s2145_s30, %s2675_s1 }
 0x962   : > { %p2147_p0 = pnand %p2146_p5, %p2443_p6 }
 0x963   : > { %p2152_p2 = por %p2151_p12, %p2150_p9 }
 0x964   : > { %p2148_p11 = pneg %p2147_p0 }
 0x965   : > { %p2154_p4 = por %p2153_p1, %p2152_p2 }
 0x967   : > { %p2155_p8 = pnand %p2154_p4, %p2148_p11 }
 0x969   : > { %2158 = shalt.err (!%p2155_p8)
}
 0x96a   : > { %1917 = dma.vmem_to_hbm [thread:$0]  (%p2443_p6), %s2677_s20, 128, %s2675_s1, %s1587_s21  }
 0x96b PF: > { %s2766_s12 = sld [smem:[#allocation16_spill]]  ;;  %s2767_s15 = sld [smem:[#allocation17_spill]] }
 0x96c   : > { %p2769_p7 = scmp.ge.s32.totalorder %s2205_s28, 2 }
 0x971   : > { %s1612_s24 = sand.u32 1, %s2766_s12   ;;  %p2768_p3 = scmp.ne.s32.totalorder %s2767_s15, 0 }
 0x972   : > { %s1613_s29 = scalar_lea.sflag [#allocation5], %s1612_s24 }
 0x973   : > { %p1934_p10 = pnand %p2769_p7, %p2768_p3 }
 0x975   : > { %2188 = dma.done.wait (!%p1934_p10), %s1613_s29, 128  }
 0x976   : > { %2190 = vsyncadd (!%p1934_p10), %s1613_s29, 4294967168  ;;  %p28_p13 = scmp.ge.s32.totalorder %s2429_s19, 4   ;;  %s2770_s25 = smov %s2197_s26 }
 0x977   : > { %s2771_s26 = smov %s2201_s27  ;;  %s2772_s27 = smov %s2439_s13 }
 0x978   : > { %s2773_s28 = smov %s2429_s19  ;;  %30 = sbr.rel (!%p28_p13) target bundleno = 13 (0xd), region = 129 }
 0x97f   :  { %1618 = vsyncpa [#allocation4], 1 }
 0x980   :  { %1620 = vsyncpa [#allocation4 + $0x1], 1 }
 0x981   :  { %1621 = vsyncpa [#allocation7], 1 }
 0x982   :  { %1622 = vsyncpa [#allocation10], 1 }
 0x983   :  { %1623 = vsyncpa [#allocation5], 1 }
 0x984   :  { %1625 = vsyncpa [#allocation5 + $0x1], 1 }

// kernel: tpu_custom_call.1
= control target key start
LH: loop header
LB: loop body
LE: loop exit
PB: predicated region body
PF: predicated region fallthrough
CT: control target
= control target key end

     0   :  { %s2720_s0 = inlined_call_operand.hbm [shape: f32[2,8,32], index: 0, kind: input, shape index: {}]   ;;  %s2721_s1 = inlined_call_operand.vmem [shape: f32[32,96], index: 1, kind: input, shape index: {}]   ;;  %s2722_s2 = inlined_call_operand.vmem [shape: f32[1,96], index: 2, kind: input, shape index: {}]   ;;  %s2723_s3 = inlined_call_operand.vmem [shape: f32[32,32], index: 3, kind: input, shape index: {}]   ;;  %s2724_s4 = inlined_call_operand.vmem [shape: f32[1,32], index: 4, kind: input, shape index: {}]   ;;  %s2725_s5 = inlined_call_operand.hbm [shape: f32[1,32], index: 5, kind: input, shape index: {}]   ;;  %s2726_s6 = inlined_call_operand.hbm [shape: f32[1,32], index: 6, kind: input, shape index: {}]   ;;  %s2727_s7 = inlined_call_operand.vmem [shape: f32[32,64], index: 7, kind: input, shape index: {}]   ;;  %s2728_s8 = inlined_call_operand.hbm [shape: f32[1,64], index: 8, kind: input, shape index: {}]   ;;  %s2729_s9 = inlined_call_operand.vmem [shape: f32[64,32], index: 9, kind: input, shape index: {}]   ;;  %s2730_s10 = inlined_call_operand.vmem [shape: f32[1,32], index: 10, kind: input, shape index: {}]   ;;  %s2731_s11 = inlined_call_operand.vmem [shape: f32[1,32], index: 11, kind: input, shape index: {}]   ;;  %s2732_s12 = inlined_call_operand.vmem [shape: f32[1,32], index: 12, kind: input, shape index: {}]   ;;  %s2733_s13 = inlined_call_operand.hbm [shape: f32[2,8,32], index: 13, kind: output, shape index: {}]  }
   0x1   :  { %2740 = sst [smem:[#allocation18_spill]] %s2720_s0 }
   0x2   :  { %2741 = sst [smem:[#allocation19_spill]] %s2721_s1 }
   0x3   :  { %2742 = sst [smem:[#allocation20_spill]] %s2731_s11 }
   0x4   :  { %2743 = sst [smem:[#allocation21_spill]] %s2732_s12 }
   0x5   :  { %2744 = sst [smem:[#allocation22_spill]] %s2733_s13 }
   0x6   :  { %18 = vsyncpa [#allocation4], 0 }
   0x7   :  { %20 = vsyncpa [#allocation4 + $0x1], 0 }
   0x8   :  { %21 = vsyncpa [#allocation7], 0 }
   0x9   :  { %22 = vsyncpa [#allocation10], 0 }
   0xa   :  { %23 = vsyncpa [#allocation5], 0 }
   0xb   :  { %25 = vsyncpa [#allocation5 + $0x1], 0  ;;  %s2299_s25 = smov 0   ;;  %s2301_s26 = smov 0  }
   0xc   :  { %s2303_s27 = smov 0   ;;  %s2305_s28 = smov 0  }
   0xd LB: > { %2745 = sst [smem:[#allocation16_spill]] %s2193_s25  ;;  %s2320_s29 = sadd.s32 4294967295, %s2205_s28   ;;  %s2205_s28 = sphi %s2305_s28, %s2773_s28   ;;  %s2201_s27 = sphi %s2303_s27, %s2772_s27   ;;  %s2197_s26 = sphi %s2301_s26, %s2771_s26   ;;  %s2193_s25 = sphi %s2299_s25, %s2770_s25  }
   0xe   : > { %s1699_s30 = sadd.s32 4294967294, %s2205_s28   ;;  %p51_p0 = scmp.ne.s32.totalorder %s2197_s26, %s2193_s25 }
   0xf   : > { %p2737_p1 = scmp.eq.s32.totalorder %s2320_s29, 0  ;;  %p333_p3 = scmp.eq.s32.totalorder %s1699_s30, 1 }
  0x10   : > { %p1700_p5 = scmp.ge.s32.totalorder %s2205_s28, 1  ;;  %p340_p7 = scmp.lt.s32.totalorder %s2205_s28, 3 }
  0x11   : > { %p2329_p4 = por %p2737_p1, %p51_p0  ;;  %p2334_p6 = por %p333_p3, %p51_p0 }
  0x12   : > { %p2339_p8 = pnand %p1700_p5, %p340_p7  ;;  %s2207_s17 = smov [#allocation6]  }
  0x13   : > { %s2746_s14 = scalar_select %p2329_p4, 1, 0 }
  0x14   : > { %s2747_s15 = scalar_select %p2334_p6, 1, 0 }
  0x15   : > { %s2749_s16 = scalar_select %p2339_p8, 1, 0 }
  0x16   : > { %2748 = sst [smem:[#allocation17_spill]] %s2747_s15  ;;  %s365_s18 = sshll.u32 %s2207_s17, 4  ;;  %s366_s18 = int_to_ptr.vmem [resolvable:$true] %s365_s18 }
  0x17   : > { %p1919_p10 = pneg %p2339_p8  ;;  %s2208_s19 = smov [#allocation8]  }
  0x18   : > { %s376_s20 = sshll.u32 %s2208_s19, 4  ;;  %s2209_s22 = smov [#allocation9]   ;;  %s2352_s20 = int_to_ptr.vmem [resolvable:$true] %s376_s20 }
  0x19   : > { %p2348_p11 = pnand %p1919_p10, %p2737_p1  ;;  %s390_s23 = sshll.u32 %s2209_s22, 4  ;;  %s2354_s23 = int_to_ptr.vmem [resolvable:$true] %s390_s23 }
  0x1a   : > { %s2017_s17 = scalar_lea.hbm %s2725_s5, 16 }
  0x1b   : > { %p2018_p12 = scmp.ne.s32.totalorder %s2725_s5, %s2017_s17  ;;  %p2364_p13 = pneg %p2348_p11 }
  0x1c   : > { %p2024_p5 = scmp.lt.u32.totalorder %s2017_s17, %s2725_s5 }
  0x1d   : > { %p2020_p0 = pnand %p2364_p13, %p2018_p12 }
  0x1f   : > { %p2021_p3 = pneg %p2020_p0 }
  0x21   : > { %p2026_p7 = pnand %p2024_p5, %p2021_p3 }
  0x23   : > { %2029 = shalt.err (!%p2026_p7)
}
  0x24   : > { %s2030_s24 = scalar_lea.vmem %s366_s18, 16  ;;  %s2037_s25 = scalar_lea.vmem %s366_s18, 32 }
  0x25   : > { %p2031_p10 = scmp.ne.s32.totalorder %s366_s18, %s2030_s24  ;;  %p2038_p2 = scmp.lt.s32.totalorder %s366_s18, %s366_s18 }
  0x26   : > { %p2039_p6 = scmp.lt.s32.totalorder %s2037_s25, %s2030_s24 }
  0x27   : > { %p2033_p9 = pnand %p2031_p10, %p2364_p13 }
  0x28   : > { %p2040_p4 = por %p2039_p6, %p2038_p2 }
  0x29   : > { %p2034_p1 = pneg %p2033_p9 }
  0x2b   : > { %p2041_p8 = pnand %p2040_p4, %p2034_p1 }
  0x2d   : > { %2044 = shalt.err (!%p2041_p8)
}
  0x2e   : > { %1922 = dma.hbm_to_vmem [thread:$0]  (!%p2348_p11), %s2725_s5, 16, %s366_s18, [#allocation7]  }
  0x2f   : > { %s2045_s22 = scalar_lea.hbm %s2726_s6, 16 }
  0x30   : > { %p2046_p9 = scmp.ne.s32.totalorder %s2726_s6, %s2045_s22  ;;  %p2052_p1 = scmp.lt.u32.totalorder %s2045_s22, %s2726_s6 }
  0x32   : > { %p2048_p12 = pnand %p2046_p9, %p2364_p13 }
  0x34   : > { %p2049_p2 = pneg %p2048_p12 }
  0x36   : > { %p2054_p4 = pnand %p2052_p1, %p2049_p2 }
  0x38   : > { %2057 = shalt.err (!%p2054_p4)
}
  0x39   : > { %s2058_s18 = scalar_lea.vmem %s2352_s20, 16  ;;  %s2065_s11 = scalar_lea.vmem %s2352_s20, 32 }
  0x3a   : > { %p2059_p6 = scmp.ne.s32.totalorder %s2352_s20, %s2058_s18  ;;  %p2066_p3 = scmp.lt.s32.totalorder %s2352_s20, %s2352_s20 }
  0x3b   : > { %p2067_p5 = scmp.lt.s32.totalorder %s2065_s11, %s2058_s18 }
  0x3c   : > { %p2061_p8 = pnand %p2059_p6, %p2364_p13 }
  0x3d   : > { %p2068_p7 = por %p2067_p5, %p2066_p3 }
  0x3e   : > { %p2062_p0 = pneg %p2061_p8 }
  0x40   : > { %p2069_p10 = pnand %p2068_p7, %p2062_p0 }
  0x42   : > { %2072 = shalt.err (!%p2069_p10)
}
  0x43   : > { %1925 = dma.hbm_to_vmem [thread:$0]  (!%p2348_p11), %s2726_s6, 16, %s2352_s20, [#allocation7]  }
  0x44   : > { %s2073_s17 = scalar_lea.hbm %s2728_s8, 16 }
  0x45   : > { %p2074_p9 = scmp.ne.s32.totalorder %s2728_s8, %s2073_s17  ;;  %p2080_p1 = scmp.lt.u32.totalorder %s2073_s17, %s2728_s8 }
  0x47   : > { %p2076_p12 = pnand %p2074_p9, %p2364_p13 }
  0x49   : > { %p2077_p2 = pneg %p2076_p12 }
  0x4b   : > { %p2082_p4 = pnand %p2080_p1, %p2077_p2 }
  0x4d   : > { %2085 = shalt.err (!%p2082_p4)
}
  0x4e   : > { %s2086_s20 = scalar_lea.vmem %s2354_s23, 16  ;;  %s2093_s11 = scalar_lea.vmem %s2354_s23, 32 }
  0x4f   : > { %p2087_p6 = scmp.ne.s32.totalorder %s2354_s23, %s2086_s20  ;;  %p2094_p3 = scmp.lt.s32.totalorder %s2354_s23, %s2354_s23 }
  0x50   : > { %p2095_p5 = scmp.lt.s32.totalorder %s2093_s11, %s2086_s20 }
  0x51   : > { %p2089_p8 = pnand %p2087_p6, %p2364_p13 }
  0x52   : > { %p2096_p7 = por %p2095_p5, %p2094_p3 }
  0x53   : > { %p2090_p0 = pneg %p2089_p8 }
  0x55   : > { %p2097_p10 = pnand %p2096_p7, %p2090_p0 }
  0x57   : > { %2100 = shalt.err (!%p2097_p10)
}
  0x58   : > { %1928 = dma.hbm_to_vmem [thread:$0]  (!%p2348_p11), %s2728_s8, 16, %s2354_s23, [#allocation10]  }
  0x59   : > { %s2429_s19 = sadd.s32 1, %s2205_s28   ;;  %s38_s30 = sadd.s32 1, %s2201_s27 }
  0x5a   : > { %s35_s21 = ssub.s32 %s2205_s28, %s2429_s19  ;;  %p45_p9 = scmp.ne.s32.totalorder %s2201_s27, %s2197_s26 }
  0x5b   : > { %p36_p13 = scmp.eq.s32.totalorder %s35_s21, 0  ;;  %p46_p12 = scmp.eq.s32.totalorder %s2205_s28, 0 }
  0x5c   : > { %p1940_p2 = scmp.lt.s32.totalorder %s2205_s28, 2  ;;  %p2752_p4 = scmp.eq.s32.totalorder %s2320_s29, 1 }
  0x5d   : > { %s2439_s13 = scalar_select %p36_p13, %s2201_s27, %s38_s30  }
  0x5e   : > { %p47_p1 = por %p46_p12, %p45_p9  ;;  %p2443_p6 = por %p2752_p4, %p45_p9 }
  0x5f   : > { %s413_s22 = sand.u32 1, %s2201_s27   ;;  %s1706_s24 = sshll.u32 %s2205_s28, 7 }
  0x60   : > { %s1705_s23 = sshll.u32 %s413_s22, 3  ;;  %s2754_s0 = sld [smem:[#allocation18_spill]] }
  0x61   : > { %s417_s11 = scalar_lea.vmem [#allocation3], %s1705_s23  ;;  %p2454_p11 = pnand %p1940_p2, %p47_p1 }
  0x62   : > { %s424_s12 = sshll.u32 %s417_s11, 4  ;;  %s414_s21 = scalar_lea.sflag [#allocation4], %s413_s22  ;;  %s2458_s12 = int_to_ptr.vmem [resolvable:$true] %s424_s12 }
  0x63   : > { %p2103_p0 = pneg %p2454_p11 }
  0x66   : > { %s2452_s20 = scalar_lea.hbm %s2754_s0, %s1706_s24  ;;  %s2106_s25 = scalar_lea.hbm %s2754_s0, 256 }
  0x67   : > { %s2101_s30 = scalar_lea.hbm %s2452_s20, 128  ;;  %p2107_p7 = scmp.lt.u32.totalorder %s2452_s20, %s2754_s0 }
  0x68   : > { %p2102_p8 = scmp.ne.s32.totalorder %s2452_s20, %s2101_s30  ;;  %p2108_p10 = scmp.lt.u32.totalorder %s2106_s25, %s2101_s30 }
  0x69   : > { %p2110_p9 = scmp.lt.u32.totalorder %s2101_s30, %s2452_s20 }
  0x6a   : > { %p2104_p3 = pnand %p2103_p0, %p2102_p8  ;;  %p2109_p13 = por %p2108_p10, %p2107_p7 }
  0x6c   : > { %p2105_p5 = pneg %p2104_p3  ;;  %p2111_p12 = por %p2110_p9, %p2109_p13 }
  0x6e   : > { %p2112_p2 = pnand %p2111_p12, %p2105_p5 }
  0x70   : > { %2115 = shalt.err (!%p2112_p2)
}
  0x71   : > { %s2116_s22 = scalar_lea.vmem %s2458_s12, 128  ;;  %s2210_s24 = smov [#allocation3]  }
  0x72   : > { %p2117_p1 = scmp.ne.s32.totalorder %s2458_s12, %s2116_s22  ;;  %s2121_s23 = sshll.u32 %s2210_s24, 4  ;;  %s2122_s23 = int_to_ptr.vmem [resolvable:$false] %s2121_s23 }
  0x73   : > { %s2123_s18 = scalar_lea.vmem %s2122_s23, 256  ;;  %p2124_p3 = scmp.lt.s32.totalorder %s2458_s12, %s2122_s23 }
  0x74   : > { %p2119_p4 = pnand %p2117_p1, %p2103_p0  ;;  %p2125_p7 = scmp.lt.s32.totalorder %s2123_s18, %s2116_s22 }
  0x76   : > { %p2120_p8 = pneg %p2119_p4  ;;  %p2126_p10 = por %p2125_p7, %p2124_p3 }
  0x78   : > { %p2127_p13 = pnand %p2126_p10, %p2120_p8 }
  0x7a   : > { %2130 = shalt.err (!%p2127_p13)
}
  0x7b   : > { %1932 = dma.hbm_to_vmem [thread:$0]  (!%p2454_p11), %s2452_s20, 128, %s2458_s12, %s414_s21  }
  0x7c   : > { %p2756_p5 = scmp.ne.s32.totalorder %s2749_s16, 0 }
  0x7d   : > { %s2488_s30 = sand.u32 (!%p2756_p5), 1, %s2197_s26   ;;  %p2757_p0 = scmp.ne.s32.totalorder (!%p2756_p5), %s2746_s14, 0 }
  0x7e   : > { %433 = sbr.rel (%p2756_p5) target bundleno = 2411 (0x96b), region = 72  ;;  %s1708_s25 = sshll.u32 (!%p2756_p5), %s2488_s30, 3 }
  0x7f   : > { %s436_s11 = scalar_lea.sflag (!%p2756_p5), [#allocation4], %s2488_s30  ;;  %s439_s22 = scalar_lea.vmem (!%p2756_p5), [#allocation3], %s1708_s25 }
  0x85   : > { %2176 = dma.done.wait (%p2757_p0), %s436_s11, 128  }
  0x86   : > { %2178 = vsyncadd (%p2757_p0), %s436_s11, 4294967168  ;;  %p2758_p11 = scmp.eq.s32.totalorder %s2320_s29, 0 }
  0x88   : > { %2180 = dma.done.wait (%p2758_p11), [#allocation7], 32   ;;  %p2759_p9 = pmov %p2758_p11 }
  0x8a   : > { %2182 = vsyncadd (%p2759_p9), [#allocation7], 4294967264  ;;  %p2760_p12 = pmov %p2759_p9 }
  0x8b   : > { %p2761_p2 = pmov %p2759_p9 }
  0x8c   : > { %2184 = dma.done.wait (%p2760_p12), [#allocation10], 16  }
  0x8d   : > { %2186 = vsyncadd (%p2761_p2), [#allocation10], 4294967280  ;;  %v2211_v0 = vmov 0.0|0.0   ;;  %vm2212_vm0 = vmmov 0   ;;  %v2213_v1 = vmov 0.0   ;;  %s2762_s1 = sld [smem:[#allocation19_spill]] }
  0x8e   : > { %1873 = vmatprep.subr.bf16.mxu1 %v2211_v0  ;;  %1789 = vmatprep.mubr.msk.f32.mxu1 %vm2212_vm0, %v2213_v1  ;;  %v2525_v8 = vld [vmem:[%s439_s22] sm:$0xff]  ;;  %vm506_vm1 = vcmask 261120   ;;  %v1713_v9 = vld [vmem:[%s2722_s2] ss:$0 sm:$0xff]  ;;  %s2214_s14 = smov 120   ;;  %s2215_s22 = smov 96  }
  0x8f   : > { %1802 = vmatprep.subr.mxu0 %v2213_v1  ;;  %1804 = vmatprep.mubr.msk.f32.mxu0 %vm2212_vm0, %v2213_v1  ;;  %s2216_s16 = smov 80   ;;  %s2217_s20 = smov 88   ;;  %vm583_vm2 = vcmask 64512   ;;  %vm915_vm3 = vcmask 130112   ;;  %vm1086_vm4 = vcmask 195712   ;;  %vm1257_vm5 = vcmask 261312  }
  0x90   : > { %s2218_s12 = smov 72   ;;  %s2219_s15 = smov 112   ;;  %vm1478_vm6 = vcmask 523264  }
  0x91   : > { %s2220_s21 = smov 104   ;;  %s2221_s24 = smov 56  }
  0x92   : > { %s2222_s23 = smov 64   ;;  %s2223_s18 = smov 48  }
  0x93   : > { %v495_v2 = vld [vmem:[%s2762_s1] sm:$0xff]  ;;  %v496_v3 = vld [vmem:[%s2762_s1 + $0x8] sm:$0xff]  ;;  %v497_v4 = vld [vmem:[%s2762_s1 + $0x10] sm:$0xff]  ;;  %s2224_s11 = smov 40   ;;  %s2765_s0 = sld [smem:[#allocation22_spill]] }
  0x94   : > { %v1874_v5 = vpack.c.bf16 %v496_v3, %v495_v2  ;;  %v498_v6 = vld [vmem:[%s2762_s1 + $0x18] sm:$0xff] }
  0x95   : > { %v1877_v7 = vpack.c.bf16 %v498_v6, %v497_v4 }
  0x96   : > { %1875 = vmatpush3.bf16.msra.mxu1 %v1874_v5 }
  0x97   : > { %1876 = vmatprep.subr.bf16.mxu1 %v2211_v0 }
  0x9a   : > { %1878 = vmatpush3.bf16.msra.mxu1 %v1877_v7 }
  0x9b   : > { %1792 = vmatprep.subr.mxu1 %v2213_v1 }
  0x9d   : > { %1790 = vmatmul.mubr.msk.f32.vlgmr.msra.gmra.mrb[0].mxu1 %vm506_vm1, %v2525_v8 }
  0x9e   : > { %1794 = vmatprep.mubr.msk.f32.mxu1 %vm2212_vm0, %v2213_v1 }
 0x170   : > { %v576_v10 = vpop.f32.mrb[0].mxu1 }
 0x171   : > { %v2535_v11 = vadd.f32 %v1713_v9, %v576_v10  ;;  %v1791_v12 = vpop.f32.mrb[1].mxu1 }
 0x172   : > { %v1261_v12 = vld [vmem:[%s2723_s3 + $0x8] sm:$0xff] }
 0x173   : > { %746 = vrot.lane.b32.xlu1 %v2535_v11, %s2214_s14  ;;  %581 = vrot.lane.b32.xlu0 %v2535_v11, %s2215_s22  ;;  %s2225_s14 = smov 8   ;;  %s1738_s22 = sshll.u32 %s2320_s29, 7 }
 0x174   : > { %s2675_s1 = scalar_lea.hbm %s2765_s0, %s1738_s22  ;;  %s2228_s29 = smov [#allocation11]  }
 0x177   : > { %919 = vrot.lane.b32.xlu1 %v2535_v11, %s2216_s16  ;;  %748 = vrot.lane.b32.xlu0 %v2535_v11, %s2217_s20  ;;  %s493_s16 = scalar_lea.vmem [#allocation11], %s1708_s25  ;;  %s2135_s25 = sshll.u32 %s2228_s29, 4  ;;  %s2136_s25 = int_to_ptr.vmem [resolvable:$false] %s2135_s25 }
 0x178   : > { %s1600_s20 = sshll.u32 %s493_s16, 4  ;;  %s2677_s20 = int_to_ptr.vmem [resolvable:$true] %s1600_s20 }
 0x179   : > { %p2138_p3 = scmp.lt.s32.totalorder %s2677_s20, %s2136_s25 }
 0x17b   : > { %1090 = vrot.lane.b32.xlu1 %v2535_v11, %s2218_s12  ;;  %917 = vrot.lane.b32.xlu0 %v2535_v11, %s2219_s15 }
 0x17f   : > { %1088 = vrot.lane.b32.xlu0 %v2535_v11, %s2220_s21  ;;  %s1587_s21 = scalar_lea.sflag [#allocation5], %s2488_s30 }
 0x1e5   : > { %v747_v13 = vpop.permute.xlu1 %746  ;;  %v582_v14 = vpop.permute.xlu0 %581 }
 0x1e6   : > { %1793 = vmatpush3.xpose.msk.msra.mxu1 %vm583_vm2, %v582_v14  ;;  %v1262_v14 = vld [vmem:[%s2723_s3 + $0x10] sm:$0xff] }
 0x1e7   : > { %1797 = vmatprep.subr.mxu1 %v2213_v1 }
 0x1e9   : > { %1795 = vmatmul.mubr.msk.f32.vlgmr.msra.gmra.mrb[2].mxu1 %vm583_vm2, %v2535_v11  ;;  %v749_v15 = vpop.permute.xlu0 %748  ;;  %v920_v16 = vpop.permute.xlu1 %919 }
 0x1ea   : > { %1803 = vmatpush3.xpose.msk.msra.mxu0 %vm583_vm2, %v749_v15  ;;  %1799 = vmatprep.mubr.msk.f32.mxu1 %vm2212_vm0, %v2213_v1  ;;  %v1263_v15 = vld [vmem:[%s2723_s3 + $0x18] sm:$0xff] }
 0x1eb   : > { %1812 = vmatprep.subr.mxu0 %v2213_v1 }
 0x1ed   : > { %1805 = vmatmul.mubr.msk.f32.vlgmr.msra.gmra.mrb[0].mxu0 %vm583_vm2, %v747_v13  ;;  %v918_v17 = vpop.permute.xlu0 %917  ;;  %v1091_v18 = vpop.permute.xlu1 %1090 }
 0x1ee   : > { %1813 = vmatpush3.xpose.msk.msra.mxu0 %vm583_vm2, %v920_v16  ;;  %1814 = vmatprep.mubr.msk.f32.mxu0 %vm2212_vm0, %v2213_v1  ;;  %v1883_v16 = vpack.c.bf16 %v1263_v15, %v1262_v14 }
 0x1ef   : > { %1822 = vmatprep.subr.mxu0 %v2213_v1 }
 0x1f1   : > { %1815 = vmatmul.mubr.msk.f32.vlgmr.msra.gmra.mrb[2].mxu0 %vm583_vm2, %v918_v17  ;;  %v1089_v19 = vpop.permute.xlu0 %1088 }
 0x1f2   : > { %1823 = vmatpush3.xpose.msk.msra.mxu0 %vm583_vm2, %v1091_v18  ;;  %1824 = vmatprep.mubr.msk.f32.mxu0 %vm2212_vm0, %v2213_v1 }
 0x1f3   : > { %1879 = vmatprep.subr.bf16.mxu0 %v2211_v0 }
 0x1f5   : > { %1825 = vmatmul.mubr.msk.f32.vlgmr.msra.gmra.mrb[4].mxu0 %vm583_vm2, %v1089_v19 }
 0x1f6   : > { %1840 = vmatprep.mubr.msk.f32.mxu0 %vm2212_vm0, %v2213_v1 }
 0x2bc   : > { %v654_v20 = vpop.f32.mrb[2].mxu1 }
 0x2bd   : > { %v1796_v21 = vpop.f32.mrb[3].mxu1  ;;  %v658_v22 = vsel %vm583_vm2, %v654_v20, -inf }
 0x2be   : > { %659 = vmax.xlane.f32.xlu1 %v658_v22 }
 0x2c0   : > { %v820_v23 = vpop.f32.mrb[0].mxu0 }
 0x2c1   : > { %v1806_v24 = vpop.f32.mrb[1].mxu0  ;;  %v824_v25 = vsel %vm583_vm2, %v820_v23, -inf }
 0x2c2   : > { %825 = vmax.xlane.f32.xlu0 %v824_v25  ;;  %v1727_v25 = vld [vmem:[%s2724_s4] ss:$0 sm:$0xff] }
 0x2c4   : > { %v991_v26 = vpop.f32.mrb[2].mxu0 }
 0x2c5   : > { %v1816_v27 = vpop.f32.mrb[3].mxu0  ;;  %v995_v28 = vsel %vm583_vm2, %v991_v26, -inf }
 0x2c6   : > { %996 = vmax.xlane.f32.xlu0 %v995_v28 }
 0x2c8   : > { %v1162_v29 = vpop.f32.mrb[4].mxu0 }
 0x2c9   : > { %v1826_v30 = vpop.f32.mrb[5].mxu0  ;;  %v1166_v31 = vsel %vm583_vm2, %v1162_v29, -inf }
 0x2ca   : > { %1167 = vmax.xlane.f32.xlu1 %v1166_v31 }
 0x2db   : > { %835 = vrot.lane.b32.xlu1 %v2535_v11, %s2221_s24  ;;  %s2131_s24 = scalar_lea.vmem %s2677_s20, 128 }
 0x2dc   : > { %p2132_p1 = scmp.ne.s32.totalorder %s2677_s20, %s2131_s24 }
 0x2de   : > { %p2133_p4 = pnand %p2132_p1, %p2443_p6 }
 0x2e0   : > { %p2134_p8 = pneg %p2133_p4 }
 0x34b   : > { %v660_v32 = vpop.xlane.xlu1 %659 }
 0x34c   : > { %v661_v33 = vsub.f32 %v654_v20, %v660_v32 }
 0x34e   : > { %v662_v34 = vmul.f32 1.442695, %v661_v33  ;;  %v1379_v33 = vld [vmem:[%s2727_s7 + $0x8] sm:$0xff] }
 0x34f   : > { %v826_v35 = vpop.xlane.xlu0 %825 }
 0x350   : > { %1997 = vpow2.f32 %v662_v34  ;;  %v827_v36 = vsub.f32 %v820_v23, %v826_v35  ;;  %v1381_v35 = vld [vmem:[%s2727_s7 + $0x18] sm:$0xff] }
 0x352   : > { %v828_v37 = vmul.f32 1.442695, %v827_v36 }
 0x353   : > { %v997_v47 = vpop.xlane.xlu0 %996 }
 0x354   : > { %1999 = vpow2.f32 %v828_v37  ;;  %v998_v48 = vsub.f32 %v991_v26, %v997_v47  ;;  %v1463_v37 = vld [vmem:[%s2729_s9] sm:$0xff] }
 0x356   : > { %v999_v49 = vmul.f32 1.442695, %v998_v48 }
 0x357   : > { %v1168_v38 = vpop.xlane.xlu1 %1167 }
 0x358   : > { %v1169_v39 = vsub.f32 %v1162_v29, %v1168_v38  ;;  %v1464_v38 = vld [vmem:[%s2729_s9 + $0x8] sm:$0xff] }
 0x35a   : > { %v1998_v40 = vpop.eup %1997  ;;  %v1170_v41 = vmul.f32 1.442695, %v1169_v39  ;;  %v1465_v39 = vld [vmem:[%s2729_s9 + $0x10] sm:$0xff] }
 0x35b   : > { %v664_v42 = vsel %vm583_vm2, %v1998_v40, 0.0  ;;  %v836_v52 = vpop.permute.xlu1 %835 }
 0x35c   : > { %2001 = vpow2.f32 %v1170_v41  ;;  %665 = vadd.xlane.f32.xlu0 %v664_v42  ;;  %v1466_v41 = vld [vmem:[%s2729_s9 + $0x18] sm:$0xff] }
 0x35d   : > { %2003 = vpow2.f32 %v999_v49  ;;  %v1895_v42 = vpack.c.bf16 %v1466_v41, %v1465_v39 }
 0x35e   : > { %v2000_v43 = vpop.eup %1999 }
 0x35f   : > { %v830_v44 = vsel %vm583_vm2, %v2000_v43, 0.0 }
 0x360   : > { %831 = vadd.xlane.f32.xlu1 %v830_v44  ;;  %v1468_v44 = vld [vmem:[%s2729_s9 + $0x28] sm:$0xff] }
 0x366   : > { %v2002_v45 = vpop.eup %2001 }
 0x367   : > { %v1172_v46 = vsel %vm583_vm2, %v2002_v45, 0.0  ;;  %v2004_v50 = vpop.eup %2003 }
 0x368   : > { %1173 = vadd.xlane.f32.xlu1 %v1172_v46  ;;  %v1001_v51 = vsel %vm583_vm2, %v2004_v50, 0.0 }
 0x372   : > { %669 = vrot.lane.b32.xlu0 %v2535_v11, %s2222_s23  ;;  %s2763_s23 = sld [smem:[#allocation20_spill]] }
 0x379   : > { %1006 = vrot.lane.b32.xlu1 %v2535_v11, %s2223_s18  ;;  %s2226_s18 = smov 16  }
 0x391   : > { %1002 = vadd.xlane.f32.xlu0 %v1001_v51 }
 0x3a7   : > { %1177 = vrot.lane.b32.xlu0 %v2535_v11, %s2224_s11  ;;  %v1260_v11 = vld [vmem:[%s2723_s3] sm:$0xff]  ;;  %s2227_s11 = smov 24  }
 0x3a8   : > { %v1880_v13 = vpack.c.bf16 %v1261_v12, %v1260_v11 }
 0x3aa   : > { %1881 = vmatpush3.bf16.msra.mxu0 %v1880_v13 }
 0x3ab   : > { %1882 = vmatprep.subr.bf16.mxu0 %v2211_v0 }
 0x3ae   : > { %1884 = vmatpush3.bf16.msra.mxu0 %v1883_v16 }
 0x3af   : > { %1891 = vmatprep.subr.bf16.mxu0 %v2211_v0 }
 0x3e9   : > { %v666_v53 = vpop.xlane.xlu0 %665 }
 0x3ea   : > { %2005 = vrcp.f32 %v666_v53 }
 0x3ed   : > { %v670_v54 = vpop.permute.xlu0 %669  ;;  %v832_v55 = vpop.xlane.xlu1 %831 }
 0x3ee   : > { %2007 = vrcp.f32 %v832_v55  ;;  %1798 = vmatpush3.msra.mxu1 %v670_v54 }
 0x3ef   : > { %1807 = vmatprep.subr.mxu1 %v2213_v1 }
 0x3f4   : > { %v2006_v56 = vpop.eup %2005 }
 0x3f5   : > { %v668_v57 = vmul.f32 %v2006_v56, %v1998_v40  ;;  %v1174_v58 = vpop.xlane.xlu1 %1173  ;;  %v1892_v40 = vpack.c.bf16 %v1464_v38, %v1463_v37  ;;  %v1729_v56 = vld [vmem:[#allocation6] ss:$0 sm:$0xff] }
 0x3f7   : > { %1800 = vmatmul.mubr.msk.f32.vlgmr.msra.gmra.mrb[4].mxu1 %vm583_vm2, %v668_v57 }
 0x3f8   : > { %v2008_v59 = vpop.eup %2007  ;;  %1808 = vmatpush3.msra.mxu1 %v836_v52  ;;  %1809 = vmatprep.mubr.msk.f32.mxu1 %vm2212_vm0, %v2213_v1 }
 0x3f9   : > { %v834_v60 = vmul.f32 %v2008_v59, %v2000_v43  ;;  %v1007_v61 = vpop.permute.xlu1 %1006  ;;  %1817 = vmatprep.subr.mxu1 %v2213_v1  ;;  %v1467_v43 = vld [vmem:[%s2729_s9 + $0x20] sm:$0xff] }
 0x3fb   : > { %1810 = vmatmul.mubr.msk.f32.vlgmr.msra.gmra.mrb[6].mxu1 %vm583_vm2, %v834_v60 }
 0x3fc   : > { %1818 = vmatpush3.msra.mxu1 %v1007_v61  ;;  %1819 = vmatprep.mubr.msk.f32.mxu1 %vm2212_vm0, %v2213_v1  ;;  %v1470_v61 = vld [vmem:[%s2729_s9 + $0x38] sm:$0xff] }
 0x3fd   : > { %1827 = vmatprep.subr.mxu1 %v2213_v1 }
 0x41e   : > { %v1003_v62 = vpop.xlane.xlu0 %1002 }
 0x41f   : > { %2009 = vrcp.f32 %v1003_v62 }
 0x420   : > { %2011 = vrcp.f32 %v1174_v58  ;;  %v1730_v58 = vld [vmem:[#allocation8] ss:$0 sm:$0xff] }
 0x422   : > { %v1178_v4 = vpop.permute.xlu0 %1177 }
 0x429   : > { %v2010_v63 = vpop.eup %2009 }
 0x42a   : > { %v1005_v2 = vmul.f32 %v2010_v63, %v2004_v50  ;;  %v2012_v3 = vpop.eup %2011  ;;  %v1731_v63 = vld [vmem:[#allocation9] ss:$0 sm:$0xff] }
 0x42b   : > { %v1176_v5 = vmul.f32 %v2012_v3, %v2002_v45  ;;  %v1898_v45 = vpack.c.bf16 %v1468_v44, %v1467_v43 }
 0x42c   : > { %1820 = vmatmul.mubr.msk.f32.vlgmr.msra.gmra.mrb[8].mxu1 %vm583_vm2, %v1005_v2 }
 0x42d   : > { %1828 = vmatpush3.msra.mxu1 %v1178_v4  ;;  %1829 = vmatprep.mubr.msk.f32.mxu1 %vm2212_vm0, %v2213_v1 }
 0x42e   : > { %1885 = vmatprep.subr.bf16.mxu1 %v2211_v0 }
 0x430   : > { %1830 = vmatmul.mubr.msk.f32.vlgmr.msra.gmra.mrb[10].mxu1 %vm583_vm2, %v1176_v5 }
 0x431   : > { %1851 = vmatprep.mubr.msk.f32.mxu1 %vm2212_vm0, %v2213_v1 }
 0x4ca   : > { %v741_v6 = vpop.f32.mrb[4].mxu1 }
 0x4cb   : > { %745 = vst.msk [vmem:[#allocation2] sm:$0xff] %vm583_vm2, %v741_v6  ;;  %v1801_v7 = vpop.f32.mrb[5].mxu1  ;;  %v1733_v6 = vld [vmem:[%s2730_s10] ss:$0 sm:$0xff] }
 0x4ce   : > { %v907_v9 = vpop.f32.mrb[6].mxu1 }
 0x4cf   : > { %912 = vrot.lane.b32.xlu1 %v907_v9, %s2225_s14  ;;  %v1811_v10 = vpop.f32.mrb[7].mxu1  ;;  %s2764_s14 = sld [smem:[#allocation21_spill]] }
 0x4ff   : > { %v1078_v17 = vpop.f32.mrb[8].mxu1 }
 0x500   : > { %1083 = vrot.lane.b32.xlu0 %v1078_v17, %s2226_s18  ;;  %v1821_v18 = vpop.f32.mrb[9].mxu1 }
 0x503   : > { %v1249_v19 = vpop.f32.mrb[10].mxu1 }
 0x504   : > { %1254 = vrot.lane.b32.xlu1 %v1249_v19, %s2227_s11  ;;  %v1831_v20 = vpop.f32.mrb[11].mxu1 }
 0x541   : > { %v913_v21 = vpop.permute.xlu1 %912 }
 0x542   : > { %916 = vst.msk [vmem:[#allocation2] sm:$0xff] %vm915_vm3, %v913_v21 }
 0x572   : > { %v1084_v22 = vpop.permute.xlu0 %1083 }
 0x573   : > { %1087 = vst.msk [vmem:[#allocation2] sm:$0xff] %vm1086_vm4, %v1084_v22 }
 0x576   : > { %v1255_v23 = vpop.permute.xlu1 %1254 }
 0x577   : > { %1258 = vst.msk [vmem:[#allocation2] sm:$0xff] %vm1257_vm5, %v1255_v23 }
 0x57e   : > { %v1259_v24 = vld [vmem:[#allocation2] sm:$0xff] }
 0x57f   : > { %1841 = vmatmul.mubr.msk.f32.vlgmr.msra.gmra.mrb[6].mxu0 %vm506_vm1, %v1259_v24 }
 0x580   : > { %1870 = vmatprep.mubr.msk.f32.mxu0 %vm2212_vm0, %v2213_v1  ;;  %v1378_v1 = vld [vmem:[%s2727_s7] sm:$0xff]  ;;  %1893 = vmatpush3.bf16.msra.mxu0 %v1892_v40 }
 0x581   : > { %v1886_v34 = vpack.c.bf16 %v1379_v33, %v1378_v1  ;;  %1894 = vmatprep.subr.bf16.mxu0 %v2211_v0 }
 0x583   : > { %1887 = vmatpush3.bf16.msra.mxu1 %v1886_v34 }
 0x584   : > { %1888 = vmatprep.subr.bf16.mxu1 %v2211_v0  ;;  %1896 = vmatpush3.bf16.msra.mxu0 %v1895_v42 }
 0x585   : > { %1897 = vmatprep.subr.bf16.mxu0 %v2211_v0 }
 0x588   : > { %1899 = vmatpush3.bf16.msra.mxu0 %v1898_v45 }
 0x589   : > { %1900 = vmatprep.subr.bf16.mxu0 %v2211_v0  ;;  %v1469_v0 = vld [vmem:[%s2729_s9 + $0x30] sm:$0xff] }
 0x58a   : > { %v1901_v62 = vpack.c.bf16 %v1470_v61, %v1469_v0 }
 0x58c   : > { %1902 = vmatpush3.bf16.msra.mxu0 %v1901_v62 }
 0x652   : > { %v1340_v26 = vpop.f32.mrb[6].mxu0 }
 0x653   : > { %v1341_v27 = vadd.f32 %v1727_v25, %v1340_v26  ;;  %v1842_v28 = vpop.f32.mrb[7].mxu0  ;;  %v1735_v25 = vld [vmem:[%s2763_s23] ss:$0 sm:$0xff]  ;;  %s2137_s23 = scalar_lea.vmem %s2136_s25, 256 }
 0x654   : > { %p2139_p7 = scmp.lt.s32.totalorder %s2137_s23, %s2131_s24 }
 0x655   : > { %v1344_v29 = vadd.f32 %v1341_v27, %v2525_v8  ;;  %v1380_v8 = vld [vmem:[%s2727_s7 + $0x10] sm:$0xff]  ;;  %v1736_v27 = vld [vmem:[%s2764_s14] ss:$0 sm:$0xff] }
 0x656   : > { %v1889_v36 = vpack.c.bf16 %v1381_v35, %v1380_v8  ;;  %p2140_p10 = por %p2139_p7, %p2138_p3 }
 0x657   : > { %v1347_v30 = vsel %vm506_vm1, %v1344_v29, 0.0  ;;  %v1352_v31 = vmul.f32 %v1344_v29, %v1344_v29 }
 0x658   : > { %1348 = vadd.xlane.f32.xlu0 %v1347_v30  ;;  %1890 = vmatpush3.bf16.msra.mxu1 %v1889_v36  ;;  %p2141_p13 = pnand %p2140_p10, %p2134_p8 }
 0x659   : > { %v1353_v32 = vsel %vm506_vm1, %v1352_v31, 0.0 }
 0x65a   : > { %1354 = vadd.xlane.f32.xlu1 %v1353_v32 }
 0x6e5   : > { %v1349_v46 = vpop.xlane.xlu0 %1348 }
 0x6e6   : > { %v1351_v47 = vmul.f32 0.03125, %v1349_v46 }
 0x6e7   : > { %v1355_v48 = vpop.xlane.xlu1 %1354 }
 0x6e8   : > { %v1357_v49 = vmul.f32 %v1351_v47, %v1351_v47  ;;  %v1356_v50 = vmul.f32 0.03125, %v1355_v48  ;;  %v1360_v54 = vsub.f32 %v1344_v29, %v1351_v47 }
 0x6ea   : > { %v1358_v51 = vsub.f32 %v1356_v50, %v1357_v49 }
 0x6ec   : > { %v1359_v52 = vmax.f32 %v1358_v51, 0.0 }
 0x6ee   : > { %v1361_v53 = vadd.f32 1e-05, %v1359_v52 }
 0x6f0   : > { %2013 = vrsqrt.f32 %v1361_v53 }
 0x6fa   : > { %v2014_v55 = vpop.eup %2013 }
 0x6fb   : > { %v1363_v57 = vmul.f32 %v2014_v55, %v1360_v54 }
 0x6fd   : > { %v1370_v59 = vmul.f32 %v1729_v56, %v1363_v57 }
 0x6ff   : > { %v1377_v60 = vadd.f32 %v1730_v58, %v1370_v59 }
 0x701   : > { %1852 = vmatmul.mubr.msk.f32.vlgmr.msra.gmra.mrb[12].mxu1 %vm506_vm1, %v1377_v60 }
 0x7d4   : > { %v1458_v2 = vpop.f32.mrb[12].mxu1 }
 0x7d5   : > { %v1459_v3 = vadd.f32 %v1731_v63, %v1458_v2  ;;  %v1853_v4 = vpop.f32.mrb[13].mxu1 }
 0x7d7   : > { %v1462_v5 = vmax.f32 %v1459_v3, 0.0 }
 0x7d9   : > { %1871 = vmatmul.mubr.msk.f32.vlgmr.msra.gmra.mrb[8].mxu0 %vm1478_vm6, %v1462_v5 }
 0x8ac   : > { %v1548_v7 = vpop.f32.mrb[8].mxu0 }
 0x8ad   : > { %v1549_v9 = vadd.f32 %v1733_v6, %v1548_v7  ;;  %v1872_v10 = vpop.f32.mrb[9].mxu0 }
 0x8af   : > { %v1552_v11 = vadd.f32 %v1549_v9, %v1377_v60 }
 0x8b1   : > { %v1555_v12 = vsel %vm506_vm1, %v1552_v11, 0.0  ;;  %v1559_v13 = vmul.f32 %v1552_v11, %v1552_v11 }
 0x8b2   : > { %1556 = vadd.xlane.f32.xlu0 %v1555_v12 }
 0x8b3   : > { %v1560_v14 = vsel %vm506_vm1, %v1559_v13, 0.0 }
 0x8b6   : > { %1561 = vadd.xlane.f32.xlu0 %v1560_v14 }
 0x93f   : > { %v1557_v15 = vpop.xlane.xlu0 %1556 }
 0x940   : > { %v1558_v16 = vmul.f32 0.03125, %v1557_v15 }
 0x942   : > { %v1564_v18 = vmul.f32 %v1558_v16, %v1558_v16  ;;  %v1567_v23 = vsub.f32 %v1552_v11, %v1558_v16 }
 0x943   : > { %v1562_v17 = vpop.xlane.xlu0 %1561 }
 0x944   : > { %v1563_v19 = vmul.f32 0.03125, %v1562_v17 }
 0x946   : > { %v1565_v20 = vsub.f32 %v1563_v19, %v1564_v18 }
 0x948   : > { %v1566_v21 = vmax.f32 %v1565_v20, 0.0 }
 0x94a   : > { %v1568_v22 = vadd.f32 1e-05, %v1566_v21 }
 0x94c   : > { %2015 = vrsqrt.f32 %v1568_v22 }
 0x956   : > { %v2016_v24 = vpop.eup %2015 }
 0x957   : > { %v1570_v26 = vmul.f32 %v2016_v24, %v1567_v23 }
 0x959   : > { %v1577_v28 = vmul.f32 %v1735_v25, %v1570_v26 }
 0x95b   : > { %v1584_v29 = vadd.f32 %v1736_v27, %v1577_v28 }
 0x95d   : > { %1585 = vst.msk [vmem:[%s493_s16] sm:$0xff] %vm506_vm1, %v1584_v29 }
 0x95e   : > { %2144 = shalt.err (!%p2141_p13)
}
 0x95f   : > { %s2145_s30 = scalar_lea.hbm %s2675_s1, 128  ;;  %s2149_s14 = scalar_lea.hbm %s2765_s0, 256 }
 0x960   : > { %p2146_p5 = scmp.ne.s32.totalorder %s2675_s1, %s2145_s30  ;;  %p2150_p9 = scmp.lt.u32.totalorder %s2675_s1, %s2765_s0 }
 0x961   : > { %p2151_p12 = scmp.lt.u32.totalorder %s2149_s14, %s2145_s30  ;;  %p2153_p1 = scmp.lt.u32.totalorder %s2145_s30, %s2675_s1 }
 0x962   : > { %p2147_p0 = pnand %p2146_p5, %p2443_p6 }
 0x963   : > { %p2152_p2 = por %p2151_p12, %p2150_p9 }
 0x964   : > { %p2148_p11 = pneg %p2147_p0 }
 0x965   : > { %p2154_p4 = por %p2153_p1, %p2152_p2 }
 0x967   : > { %p2155_p8 = pnand %p2154_p4, %p2148_p11 }
 0x969   : > { %2158 = shalt.err (!%p2155_p8)
}
 0x96a   : > { %1917 = dma.vmem_to_hbm [thread:$0]  (%p2443_p6), %s2677_s20, 128, %s2675_s1, %s1587_s21  }
 0x96b PF: > { %s2766_s12 = sld [smem:[#allocation16_spill]]  ;;  %s2767_s15 = sld [smem:[#allocation17_spill]] }
 0x96c   : > { %p2769_p7 = scmp.ge.s32.totalorder %s2205_s28, 2 }
 0x971   : > { %s1612_s24 = sand.u32 1, %s2766_s12   ;;  %p2768_p3 = scmp.ne.s32.totalorder %s2767_s15, 0 }
 0x972   : > { %s1613_s29 = scalar_lea.sflag [#allocation5], %s1612_s24 }
 0x973   : > { %p1934_p10 = pnand %p2769_p7, %p2768_p3 }
 0x975   : > { %2188 = dma.done.wait (!%p1934_p10), %s1613_s29, 128  }
 0x976   : > { %2190 = vsyncadd (!%p1934_p10), %s1613_s29, 4294967168  ;;  %p28_p13 = scmp.ge.s32.totalorder %s2429_s19, 4   ;;  %s2770_s25 = smov %s2197_s26 }
 0x977   : > { %s2771_s26 = smov %s2201_s27  ;;  %s2772_s27 = smov %s2439_s13 }
 0x978   : > { %s2773_s28 = smov %s2429_s19  ;;  %30 = sbr.rel (!%p28_p13) target bundleno = 13 (0xd), region = 129 }
 0x97f   :  { %1618 = vsyncpa [#allocation4], 1 }
 0x980   :  { %1620 = vsyncpa [#allocation4 + $0x1], 1 }
 0x981   :  { %1621 = vsyncpa [#allocation7], 1 }
 0x982   :  { %1622 = vsyncpa [#allocation10], 1 }
 0x983   :  { %1623 = vsyncpa [#allocation5], 1 }
 0x984   :  { %1625 = vsyncpa [#allocation5 + $0x1], 1 }

</bundles_post_ra>
